<compile_context>
chip_gen: v5e
topology: v5e:2x2
jax: 0.10.0
libtpu: 0.0.40
codegen_flags: <defaults>
</compile_context>

<pallas_src>
import jax
import jax.numpy as jnp
from jax.experimental import pallas as pl
from jax.experimental.pallas import tpu as pltpu

LANE = 128


def _round_up(n: int, m: int) -> int:
    return ((n + m - 1) // m) * m


def _cdiv(a: int, b: int) -> int:
    return (a + b - 1) // b


def actor_kernel(x_ref, w1_ref, b1_ref, w2_ref, b2_ref, w3_ref, b3_ref, o_ref):
    # bf16 MXU inputs, f32 accumulation; biases + softmax math in f32.
    x = x_ref[...]                                                   # (tm, in_dim) bf16

    # Linear 1 + ReLU
    h1 = jnp.dot(x, w1_ref[...], preferred_element_type=jnp.float32) + b1_ref[...]
    h1 = jnp.maximum(h1, 0.0).astype(jnp.bfloat16)

    # Linear 2 + ReLU
    h2 = jnp.dot(h1, w2_ref[...], preferred_element_type=jnp.float32) + b2_ref[...]
    h2 = jnp.maximum(h2, 0.0).astype(jnp.bfloat16)

    # Linear 3 -> logits (true output width, no padded columns to mask).
    logits = jnp.dot(h2, w3_ref[...], preferred_element_type=jnp.float32) + b3_ref[...]

    # Numerically-stable softmax over the last axis, exact normalization.
    m = jnp.max(logits, axis=-1, keepdims=True)
    e = jnp.exp(logits - m)
    denom = jnp.sum(e, axis=-1, keepdims=True)
    o_ref[...] = (e / denom).astype(o_ref.dtype)


def actor_forward(x, params, *, block_m: int = 512):
    """x: (B, input_dim) f32.  params: (w1, b1, w2, b2, w3, b3), w_i (in, out)."""
    w1, b1, w2, b2, w3, b3 = params
    B, in_dim = x.shape
    h1_dim = w1.shape[1]
    h2_dim = w2.shape[1]
    out_dim = w3.shape[1]

    # Pad hidden dims to lane width (tiny resident weights, lane-dense activations).
    d_h1 = _round_up(h1_dim, LANE)
    d_h2 = _round_up(h2_dim, LANE)

    # Balanced batch tiles; at least 2 grid steps so the "parallel" axis splits
    # across both TensorCores on v7x (harmless on v5e/v6e).
    n_tiles = max(_cdiv(B, block_m), 2)
    tm = _round_up(_cdiv(B, n_tiles), 8)
    bp = _round_up(B, tm)
    grid = (bp // tm,)

    # Input: bf16, row-padded only if needed (no lane padding, no f32 copy).
    xb = x.astype(jnp.bfloat16)
    if bp != B:
        xb = jnp.zeros((bp, in_dim), jnp.bfloat16).at[:B].set(xb)

    def pad2(a, rows, cols, dtype):
        out = jnp.zeros((rows, cols), dtype)
        return out.at[: a.shape[0], : a.shape[1]].set(a.astype(dtype))

    # Weights in bf16 (MXU fast path), biases in f32. Only hidden dims padded;
    # zero-padded hidden columns stay exactly zero through ReLU and contribute
    # nothing downstream, so results are exact w.r.t. the unpadded network.
    w1p = pad2(w1, in_dim, d_h1, jnp.bfloat16)
    b1p = pad2(b1.reshape(1, -1), 1, d_h1, jnp.float32)
    w2p = pad2(w2, d_h1, d_h2, jnp.bfloat16)
    b2p = pad2(b2.reshape(1, -1), 1, d_h2, jnp.float32)
    w3p = pad2(w3, d_h2, out_dim, jnp.bfloat16)
    b3p = b3.reshape(1, -1).astype(jnp.float32)

    resident = lambda a: pl.BlockSpec(a.shape, lambda i: (0, 0))

    flops = 2 * bp * (in_dim * d_h1 + d_h1 * d_h2 + d_h2 * out_dim)
    bytes_accessed = (
        xb.size * 2                                   # bf16 input
        + bp * out_dim * 4                            # f32 output
        + (w1p.size + w2p.size + w3p.size) * 2        # bf16 weights
        + (b1p.size + b2p.size + b3p.size) * 4        # f32 biases
    )
    cost = pl.CostEstimate(
        flops=flops, transcendentals=bp * out_dim, bytes_accessed=bytes_accessed
    )

    out = pl.pallas_call(
        actor_kernel,
        out_shape=jax.ShapeDtypeStruct((bp, out_dim), jnp.float32),
        grid=grid,
        in_specs=[
            pl.BlockSpec((tm, in_dim), lambda i: (i, 0)),   # streamed batch tile
            resident(w1p), resident(b1p),                   # VMEM-resident weights
            resident(w2p), resident(b2p),
            resident(w3p), resident(b3p),
        ],
        out_specs=pl.BlockSpec((tm, out_dim), lambda i: (i, 0)),
        compiler_params=pltpu.CompilerParams(
            dimension_semantics=("parallel",),              # shard batch across TCs
        ),
        cost_estimate=cost,
    )(xb, w1p, b1p, w2p, b2p, w3p, b3p)

    return out[:B]


def actor_ref(x, params):
    """Pure-JAX f32 reference."""
    w1, b1, w2, b2, w3, b3 = params
    h1 = jnp.maximum(x @ w1 + b1, 0.0)
    h2 = jnp.maximum(h1 @ w2 + b2, 0.0)
    return jax.nn.softmax(h2 @ w3 + b3, axis=-1)


def init_params(key, input_dim, output_dim, layers):
    """Deterministic init mimicking torch.nn.Linear (uniform ±1/sqrt(fan_in))."""
    dims = [input_dim, layers[0], layers[1], output_dim]
    params = []
    for i in range(3):
        key, kw, kb = jax.random.split(key, 3)
        fan_in, fan_out = dims[i], dims[i + 1]
        bound = 1.0 / jnp.sqrt(fan_in)
        w = jax.random.uniform(kw, (fan_in, fan_out), jnp.float32, -bound, bound)
        b = jax.random.uniform(kb, (1, fan_out), jnp.float32, -bound, bound)
        params += [w, b]
    return tuple(params)


if __name__ == "__main__":
    key = jax.random.PRNGKey(0)

    batch = 512          # -> balanced tiles tm=256, grid=(2,) (both TCs on v7x)
    input_dim = 32
    layers = [64, 32]
    output_dim = 8

    key, kx = jax.random.split(key)
    x = jax.random.normal(kx, (batch, input_dim), jnp.float32)
    params = init_params(key, input_dim, output_dim, layers)

    out = actor_forward(x, params)
    out = jax.block_until_ready(out)

    assert out.shape == (batch, output_dim)
    # exact normalization -> rows sum to 1 within f32 rounding
    assert jnp.allclose(jnp.sum(out, axis=-1), 1.0, atol=1e-3)
    # match pure-JAX f32 reference (bf16 matmul inputs -> modest tolerance)
    ref = actor_ref(x, params)
    assert jnp.max(jnp.abs(out - ref)) < 3e-2

    print("KERNEL_OK")
</pallas_src>

<mosaic_0001>
module attributes {stable_mosaic.version = 11 : i64} {
  func.func @actor_kernel(%arg0: i32, %arg1: memref<256x32xbf16, #tpu.memory_space<vmem>>, %arg2: memref<32x128xbf16, #tpu.memory_space<vmem>>, %arg3: memref<1x128xf32, #tpu.memory_space<vmem>>, %arg4: memref<128x128xbf16, #tpu.memory_space<vmem>>, %arg5: memref<1x128xf32, #tpu.memory_space<vmem>>, %arg6: memref<128x8xbf16, #tpu.memory_space<vmem>>, %arg7: memref<1x8xf32, #tpu.memory_space<vmem>>, %arg8: memref<256x8xf32, #tpu.memory_space<vmem>>) attributes {dimension_semantics = [#tpu.dimension_semantics<parallel>], iteration_bounds = array<i64: 2>, scalar_prefetch = 0 : i64, scratch_operands = 0 : i64, tpu.core_type = #tpu.core_type<tc>, window_params = [{transform_indices = @transform_0, window_bounds = array<i64: 256, 32>}, {pipeline_mode = #tpu.pipeline_mode<synchronous>, transform_indices = @transform_1, window_bounds = array<i64: 32, 128>}, {pipeline_mode = #tpu.pipeline_mode<synchronous>, transform_indices = @transform_2, window_bounds = array<i64: 1, 128>}, {pipeline_mode = #tpu.pipeline_mode<synchronous>, transform_indices = @transform_3, window_bounds = array<i64: 128, 128>}, {pipeline_mode = #tpu.pipeline_mode<synchronous>, transform_indices = @transform_4, window_bounds = array<i64: 1, 128>}, {pipeline_mode = #tpu.pipeline_mode<synchronous>, transform_indices = @transform_5, window_bounds = array<i64: 128, 8>}, {pipeline_mode = #tpu.pipeline_mode<synchronous>, transform_indices = @transform_6, window_bounds = array<i64: 1, 8>}, {transform_indices = @transform_7, window_bounds = array<i64: 256, 8>}]} {
    %c0 = arith.constant 0 : index
    %c0_0 = arith.constant 0 : index
    %0 = vector.load %arg1[%c0, %c0_0] : memref<256x32xbf16, #tpu.memory_space<vmem>>, vector<256x32xbf16>
    %c0_1 = arith.constant 0 : index
    %c0_2 = arith.constant 0 : index
    %1 = vector.load %arg2[%c0_1, %c0_2] : memref<32x128xbf16, #tpu.memory_space<vmem>>, vector<32x128xbf16>
    %cst = arith.constant dense<0.000000e+00> : vector<256x128xf32>
    %2 = tpu.matmul %0, %1, %cst {dimension_numbers = #tpu.dot_dimension_numbers<[1], [0], [0], [1], [0, 0, 1, 1], [], []>} : vector<256x32xbf16>, vector<32x128xbf16>, vector<256x128xf32> -> vector<256x128xf32>
    %c0_3 = arith.constant 0 : index
    %c0_4 = arith.constant 0 : index
    %3 = vector.load %arg3[%c0_3, %c0_4] : memref<1x128xf32, #tpu.memory_space<vmem>>, vector<1x128xf32>
    %4 = vector.broadcast %3 : vector<1x128xf32> to vector<256x128xf32>
    %5 = arith.addf %2, %4 : vector<256x128xf32>
    %cst_5 = arith.constant 0.000000e+00 : f32
    %6 = vector.broadcast %cst_5 : f32 to vector<256x128xf32>
    %7 = arith.maximumf %5, %6 : vector<256x128xf32>
    %8 = arith.truncf %7 : vector<256x128xf32> to vector<256x128xbf16>
    %c0_6 = arith.constant 0 : index
    %c0_7 = arith.constant 0 : index
    %9 = vector.load %arg4[%c0_6, %c0_7] : memref<128x128xbf16, #tpu.memory_space<vmem>>, vector<128x128xbf16>
    %cst_8 = arith.constant dense<0.000000e+00> : vector<256x128xf32>
    %10 = tpu.matmul %8, %9, %cst_8 {dimension_numbers = #tpu.dot_dimension_numbers<[1], [0], [0], [1], [0, 0, 1, 1], [], []>} : vector<256x128xbf16>, vector<128x128xbf16>, vector<256x128xf32> -> vector<256x128xf32>
    %c0_9 = arith.constant 0 : index
    %c0_10 = arith.constant 0 : index
    %11 = vector.load %arg5[%c0_9, %c0_10] : memref<1x128xf32, #tpu.memory_space<vmem>>, vector<1x128xf32>
    %12 = vector.broadcast %11 : vector<1x128xf32> to vector<256x128xf32>
    %13 = arith.addf %10, %12 : vector<256x128xf32>
    %cst_11 = arith.constant 0.000000e+00 : f32
    %14 = vector.broadcast %cst_11 : f32 to vector<256x128xf32>
    %15 = arith.maximumf %13, %14 : vector<256x128xf32>
    %16 = arith.truncf %15 : vector<256x128xf32> to vector<256x128xbf16>
    %c0_12 = arith.constant 0 : index
    %c0_13 = arith.constant 0 : index
    %17 = vector.load %arg6[%c0_12, %c0_13] : memref<128x8xbf16, #tpu.memory_space<vmem>>, vector<128x8xbf16>
    %cst_14 = arith.constant dense<0.000000e+00> : vector<256x8xf32>
    %18 = tpu.matmul %16, %17, %cst_14 {dimension_numbers = #tpu.dot_dimension_numbers<[1], [0], [0], [1], [0, 0, 1, 1], [], []>} : vector<256x128xbf16>, vector<128x8xbf16>, vector<256x8xf32> -> vector<256x8xf32>
    %c0_15 = arith.constant 0 : index
    %c0_16 = arith.constant 0 : index
    %19 = vector.load %arg7[%c0_15, %c0_16] : memref<1x8xf32, #tpu.memory_space<vmem>>, vector<1x8xf32>
    %20 = vector.broadcast %19 : vector<1x8xf32> to vector<256x8xf32>
    %21 = arith.addf %18, %20 : vector<256x8xf32>
    %cst_17 = arith.constant dense<0xFF800000> : vector<256xf32>
    %22 = vector.multi_reduction <maximumf>, %21, %cst_17 [1] : vector<256x8xf32> to vector<256xf32>
    %23 = vector.shape_cast %22 : vector<256xf32> to vector<256x1xf32>
    %24 = vector.broadcast %23 : vector<256x1xf32> to vector<256x8xf32>
    %25 = arith.subf %21, %24 : vector<256x8xf32>
    %26 = math.exp %25 : vector<256x8xf32>
    %cst_18 = arith.constant dense<0.000000e+00> : vector<256xf32>
    %27 = vector.multi_reduction <add>, %26, %cst_18 [1] : vector<256x8xf32> to vector<256xf32>
    %28 = vector.shape_cast %27 : vector<256xf32> to vector<256x1xf32>
    %29 = vector.broadcast %28 : vector<256x1xf32> to vector<256x8xf32>
    %30 = arith.divf %26, %29 : vector<256x8xf32>
    %c0_19 = arith.constant 0 : index
    %c0_20 = arith.constant 0 : index
    %31 = vector.load %arg8[%c0_19, %c0_20] : memref<256x8xf32, #tpu.memory_space<vmem>>, vector<256x8xf32>
    tpu.vector_store %arg8[%c0_19, %c0_20], %30 {strides = array<i32>} : memref<256x8xf32, #tpu.memory_space<vmem>>, vector<256x8xf32>,
    return
  }
  func.func @transform_0(%arg0: i32) -> (i32, i32) {
    %c0_i32 = arith.constant 0 : i32
    %c0_i32_0 = arith.constant 0 : i32
    return %arg0, %c0_i32 : i32, i32
  }
  func.func @transform_1(%arg0: i32) -> (i32, i32) {
    %c0_i32 = arith.constant 0 : i32
    %c0_i32_0 = arith.constant 0 : i32
    %c0_i32_1 = arith.constant 0 : i32
    return %c0_i32, %c0_i32_0 : i32, i32
  }
  func.func @transform_2(%arg0: i32) -> (i32, i32) {
    %c0_i32 = arith.constant 0 : i32
    %c0_i32_0 = arith.constant 0 : i32
    %c0_i32_1 = arith.constant 0 : i32
    return %c0_i32, %c0_i32_0 : i32, i32
  }
  func.func @transform_3(%arg0: i32) -> (i32, i32) {
    %c0_i32 = arith.constant 0 : i32
    %c0_i32_0 = arith.constant 0 : i32
    %c0_i32_1 = arith.constant 0 : i32
    return %c0_i32, %c0_i32_0 : i32, i32
  }
  func.func @transform_4(%arg0: i32) -> (i32, i32) {
    %c0_i32 = arith.constant 0 : i32
    %c0_i32_0 = arith.constant 0 : i32
    %c0_i32_1 = arith.constant 0 : i32
    return %c0_i32, %c0_i32_0 : i32, i32
  }
  func.func @transform_5(%arg0: i32) -> (i32, i32) {
    %c0_i32 = arith.constant 0 : i32
    %c0_i32_0 = arith.constant 0 : i32
    %c0_i32_1 = arith.constant 0 : i32
    return %c0_i32, %c0_i32_0 : i32, i32
  }
  func.func @transform_6(%arg0: i32) -> (i32, i32) {
    %c0_i32 = arith.constant 0 : i32
    %c0_i32_0 = arith.constant 0 : i32
    %c0_i32_1 = arith.constant 0 : i32
    return %c0_i32, %c0_i32_0 : i32, i32
  }
  func.func @transform_7(%arg0: i32) -> (i32, i32) {
    %c0_i32 = arith.constant 0 : i32
    %c0_i32_0 = arith.constant 0 : i32
    return %arg0, %c0_i32 : i32, i32
  }
}

</mosaic_0001>

<bundles_post_ra>
// kernel: tpu_custom_call.1
= control target key start
LH: loop header
LB: loop body
LE: loop exit
PB: predicated region body
PF: predicated region fallthrough
CT: control target
= control target key end

     0   :  { %s2222_s24 = smov 0   ;;  %s2863_s0 = inlined_call_operand.vmem [shape: bf16[512,32], index: 0, kind: input, shape index: {}]   ;;  %s2864_s1 = inlined_call_operand.vmem [shape: bf16[32,128], index: 1, kind: input, shape index: {}]   ;;  %s2865_s2 = inlined_call_operand.vmem [shape: f32[1,128], index: 2, kind: input, shape index: {}]   ;;  %s2866_s3 = inlined_call_operand.vmem [shape: bf16[128,128], index: 3, kind: input, shape index: {}]   ;;  %s2867_s4 = inlined_call_operand.vmem [shape: f32[1,128], index: 4, kind: input, shape index: {}]   ;;  %s2868_s5 = inlined_call_operand.vmem [shape: bf16[128,8], index: 5, kind: input, shape index: {}]   ;;  %s2869_s6 = inlined_call_operand.vmem [shape: f32[1,8], index: 6, kind: input, shape index: {}]   ;;  %s2870_s7 = inlined_call_operand.vmem [shape: f32[512,8], index: 7, kind: output, shape index: {}]  }
   0x1 LB: > { %s1820_s25 = sadd.s32 4294967295, %s2180_s24   ;;  %p1824_p0 = scmp.ge.s32.totalorder %s2180_s24, 1  ;;  %s2180_s24 = sphi %s2222_s24, %s17_s24  }
   0x2   : > { %p238_p1 = scmp.lt.s32.totalorder %s2180_s24, 3 }
   0x4   : > { %p239_p2 = pnand %p1824_p0, %p238_p1 }
   0x5   : > { %s1825_s28 = sshll.u32 (!%p239_p2), %s1820_s25, 5 }
   0x6   : > { %242 = sbr.rel (%p239_p2) target bundleno = 952 (0x3b8), region = 48  ;;  %p271_p3 = scmp.lt.s32.totalorder (!%p239_p2), %s1825_s28, 63 }
   0xb   : > { %v2000_v0 = vld [vmem:[%s2864_s1 + $0x8] sm:$0xff]  ;;  %v1999_v1 = vld [vmem:[%s2864_s1] sm:$0xff]  ;;  %s2872_s28 = smov (!%p271_p3, %s1825_s28), 63  ;;  %vm415_vm0 = vcmask 261120   ;;  %v2008_v7 = vld [vmem:[%s2866_s3 + $0x38] sm:$0xff]  ;;  %vm963_vm1 = vcmask 64512  }
   0xc   : > { %470 = vmatpush.bf16.msra.mxu0 %v2000_v0  ;;  %2017 = vmatpush.bf16.msra.mxu3 %v2000_v0  ;;  %s1826_s8 = sshll.u32 %s2872_s28, 2  ;;  %v2007_v9 = vld [vmem:[%s2866_s3 + $0x30] sm:$0xff]  ;;  %v2006_v10 = vld [vmem:[%s2866_s3 + $0x28] sm:$0xff]  ;;  %v2005_v11 = vld [vmem:[%s2866_s3 + $0x20] sm:$0xff] }
   0xd   : > { %s2242_s11 = scalar_lea.vmem %s2863_s0, %s1826_s8  ;;  %669 = vmatpush.bf16.msra.mxu1 %v2008_v7  ;;  %v2004_v12 = vld [vmem:[%s2866_s3 + $0x18] sm:$0xff]  ;;  %v2003_v14 = vld [vmem:[%s2866_s3 + $0x10] sm:$0xff]  ;;  %v2002_v15 = vld [vmem:[%s2866_s3 + $0x8] sm:$0xff]  ;;  %s1828_s8 = sshll.u32 %s2872_s28, 3 }
   0xe   : > { %v1983_v2 = vld [vmem:[%s2242_s11] sm:$0xff]  ;;  %v1984_v3 = vld [vmem:[%s2242_s11 + $0x8] sm:$0xff]  ;;  %v1985_v4 = vld [vmem:[%s2242_s11 + $0x10] sm:$0xff] }
   0xf   : > { %v1986_v5 = vld [vmem:[%s2242_s11 + $0x18] sm:$0xff]  ;;  %v1987_v6 = vld [vmem:[%s2242_s11 + $0x20] sm:$0xff]  ;;  %v1988_v8 = vld [vmem:[%s2242_s11 + $0x28] sm:$0xff] }
  0x10   : > { %471 = vmatpush.bf16.msra.mxu0 %v1999_v1  ;;  %2018 = vmatpush.bf16.msra.mxu3 %v1999_v1  ;;  %v1989_v13 = vld [vmem:[%s2242_s11 + $0x30] sm:$0xff]  ;;  %v2001_v16 = vld [vmem:[%s2866_s3] sm:$0xff]  ;;  %v1990_v17 = vld [vmem:[%s2242_s11 + $0x38] sm:$0xff] }
  0x11   : > { %670 = vmatpush.bf16.msra.mxu1 %v2007_v9  ;;  %v1991_v18 = vld [vmem:[%s2242_s11 + $0x40] sm:$0xff]  ;;  %v1992_v27 = vld [vmem:[%s2242_s11 + $0x48] sm:$0xff]  ;;  %v1993_v35 = vld [vmem:[%s2242_s11 + $0x50] sm:$0xff] }
  0x12   : > { %v2288_v20 = vld [vmem:[%s2865_s2] ss:$0 sm:$0xff]  ;;  %v1996_v37 = vld [vmem:[%s2242_s11 + $0x68] sm:$0xff]  ;;  %v1994_v44 = vld [vmem:[%s2242_s11 + $0x58] sm:$0xff] }
  0x13   : > { %1901 = vmatmul.msk.bf16.vlgmr.msra.gmra.mxu0 %vm415_vm0, %v1983_v2  ;;  %1914 = vmatmul.msk.bf16.vlgmr.msra.gmra.mxu3 %vm415_vm0, %v1996_v37  ;;  %v1997_v46 = vld [vmem:[%s2242_s11 + $0x70] sm:$0xff]  ;;  %v1995_v53 = vld [vmem:[%s2242_s11 + $0x60] sm:$0xff]  ;;  %v1998_v55 = vld [vmem:[%s2242_s11 + $0x78] sm:$0xff]  ;;  %s2645_s11 = scalar_lea.vmem %s2870_s7, %s1828_s8 }
  0x14   : > { %2019 = vmatpush.bf16.msrb.mxu3 %v2008_v7  ;;  %v2016_v2 = vld [vmem:[%s2868_s5 + $0x38] sm:$0xff] }
  0x15   : > { %671 = vmatpush.bf16.msra.mxu1 %v2006_v10  ;;  %874 = vmatpush.bf16.msra.mxu2 %v2016_v2 }
  0x18   : > { %2020 = vmatpush.bf16.msrb.mxu3 %v2007_v9  ;;  %v2013_v9 = vld [vmem:[%s2868_s5 + $0x20] sm:$0xff] }
  0x19   : > { %672 = vmatpush.bf16.msra.mxu1 %v2005_v11 }
  0x1c   : > { %2021 = vmatpush.bf16.msrb.mxu3 %v2006_v10 }
  0x1d   : > { %673 = vmatpush.bf16.msra.mxu1 %v2004_v12 }
  0x20   : > { %2022 = vmatpush.bf16.msrb.mxu3 %v2005_v11 }
  0x21   : > { %674 = vmatpush.bf16.msra.mxu1 %v2003_v14 }
  0x23   : > { %1902 = vmatmul.msk.bf16.gmra.mxu0 %vm415_vm0, %v1984_v3  ;;  %1915 = vmatmul.msk.bf16.gmra.mxu3 %vm415_vm0, %v1997_v46 }
  0x24   : > { %2023 = vmatpush.bf16.msrb.mxu3 %v2004_v12 }
  0x25   : > { %675 = vmatpush.bf16.msra.mxu1 %v2002_v15 }
  0x28   : > { %2024 = vmatpush.bf16.msrb.mxu3 %v2003_v14 }
  0x29   : > { %676 = vmatpush.bf16.msra.mxu1 %v2001_v16 }
  0x2c   : > { %2025 = vmatpush.bf16.msrb.mxu3 %v2002_v15 }
  0x30   : > { %2026 = vmatpush.bf16.msrb.mxu3 %v2001_v16 }
  0x33   : > { %1903 = vmatmul.msk.bf16.gmra.mxu0 %vm415_vm0, %v1985_v4  ;;  %1916 = vmatmul.msk.bf16.gmra.mxu3 %vm415_vm0, %v1998_v55 }
  0x34   : > { %2027 = vmatpush.bf16.msra.mxu3 %v2016_v2 }
  0x43   : > { %1904 = vmatmul.msk.bf16.gmra.mxu0 %vm415_vm0, %v1986_v5 }
  0x53   : > { %1905 = vmatmul.msk.bf16.gmra.mxu0 %vm415_vm0, %v1987_v6  ;;  %v2015_v6 = vld [vmem:[%s2868_s5 + $0x30] sm:$0xff] }
  0x54   : > { %875 = vmatpush.bf16.msra.mxu2 %v2015_v6  ;;  %2028 = vmatpush.bf16.msra.mxu3 %v2015_v6 }
  0x63   : > { %1906 = vmatmul.msk.bf16.gmra.mxu0 %vm415_vm0, %v1988_v8  ;;  %v2014_v8 = vld [vmem:[%s2868_s5 + $0x28] sm:$0xff] }
  0x64   : > { %876 = vmatpush.bf16.msra.mxu2 %v2014_v8  ;;  %2029 = vmatpush.bf16.msra.mxu3 %v2014_v8 }
  0x68   : > { %877 = vmatpush.bf16.msra.mxu2 %v2013_v9  ;;  %2030 = vmatpush.bf16.msra.mxu3 %v2013_v9 }
  0x73   : > { %1907 = vmatmul.msk.bf16.gmra.mxu0 %vm415_vm0, %v1989_v13  ;;  %v2012_v13 = vld [vmem:[%s2868_s5 + $0x18] sm:$0xff] }
  0x74   : > { %878 = vmatpush.bf16.msra.mxu2 %v2012_v13  ;;  %2031 = vmatpush.bf16.msra.mxu3 %v2012_v13 }
  0x83   : > { %1908 = vmatmul.msk.bf16.gmra.mxu0 %vm415_vm0, %v1990_v17  ;;  %v2011_v17 = vld [vmem:[%s2868_s5 + $0x10] sm:$0xff] }
  0x84   : > { %879 = vmatpush.bf16.msra.mxu2 %v2011_v17  ;;  %2032 = vmatpush.bf16.msra.mxu3 %v2011_v17 }
  0x90   : > { %v473_v19 = vpop.f32.mrf.mxu0 }
  0x91   : > { %v474_v21 = vadd.f32 %v2288_v20, %v473_v19  ;;  %v2010_v19 = vld [vmem:[%s2868_s5 + $0x8] sm:$0xff] }
  0x92   : > { %880 = vmatpush.bf16.msra.mxu2 %v2010_v19  ;;  %2033 = vmatpush.bf16.msra.mxu3 %v2010_v19 }
  0x93   : > { %1909 = vmatmul.msk.bf16.gmra.mxu0 %vm415_vm0, %v1991_v18  ;;  %v553_v24 = vmax.f32 %v474_v21, 0.0  ;;  %v2009_v21 = vld [vmem:[%s2868_s5] sm:$0xff] }
  0x96   : > { %881 = vmatpush.bf16.msra.mxu2 %v2009_v21  ;;  %2034 = vmatpush.bf16.msra.mxu3 %v2009_v21 }
  0x98   : > { %v475_v22 = vpop.f32.mrf.mxu0 }
  0x99   : > { %v476_v23 = vadd.f32 %v2288_v20, %v475_v22 }
  0x9b   : > { %v554_v25 = vmax.f32 %v476_v23, 0.0 }
  0x9d   : > { %v585_v26 = vpack.c.bf16 %v554_v25, %v553_v24 }
  0x9f   : > { %677 = vmatmul.bf16.vlgmr.msra.gmra.mxu1 %v585_v26 }
  0xa0   : > { %v478_v28 = vpop.f32.mrf.mxu0 }
  0xa1   : > { %v479_v29 = vadd.f32 %v2288_v20, %v478_v28 }
  0xa3   : > { %1910 = vmatmul.msk.bf16.gmra.mxu0 %vm415_vm0, %v1992_v27  ;;  %v555_v32 = vmax.f32 %v479_v29, 0.0 }
  0xa8   : > { %v480_v30 = vpop.f32.mrf.mxu0 }
  0xa9   : > { %v481_v31 = vadd.f32 %v2288_v20, %v480_v30 }
  0xab   : > { %v556_v33 = vmax.f32 %v481_v31, 0.0 }
  0xad   : > { %v586_v34 = vpack.c.bf16 %v556_v33, %v555_v32 }
  0xaf   : > { %682 = vmatmul.bf16.gmra.mxu1 %v586_v34 }
  0xb0   : > { %v483_v36 = vpop.f32.mrf.mxu0 }
  0xb1   : > { %v484_v38 = vadd.f32 %v2288_v20, %v483_v36  ;;  %v2350_v36 = vld [vmem:[%s2867_s4] ss:$0 sm:$0xff] }
  0xb3   : > { %1911 = vmatmul.msk.bf16.gmra.mxu0 %vm415_vm0, %v1993_v35  ;;  %v557_v41 = vmax.f32 %v484_v38, 0.0 }
  0xb8   : > { %v485_v39 = vpop.f32.mrf.mxu0 }
  0xb9   : > { %v486_v40 = vadd.f32 %v2288_v20, %v485_v39 }
  0xbb   : > { %v558_v42 = vmax.f32 %v486_v40, 0.0 }
  0xbd   : > { %v587_v43 = vpack.c.bf16 %v558_v42, %v557_v41 }
  0xbf   : > { %687 = vmatmul.bf16.gmra.mxu1 %v587_v43 }
  0xc0   : > { %v488_v45 = vpop.f32.mrf.mxu0 }
  0xc1   : > { %v489_v47 = vadd.f32 %v2288_v20, %v488_v45 }
  0xc3   : > { %1912 = vmatmul.msk.bf16.gmra.mxu0 %vm415_vm0, %v1994_v44  ;;  %v559_v50 = vmax.f32 %v489_v47, 0.0 }
  0xc8   : > { %v490_v48 = vpop.f32.mrf.mxu0 }
  0xc9   : > { %v491_v49 = vadd.f32 %v2288_v20, %v490_v48 }
  0xcb   : > { %v560_v51 = vmax.f32 %v491_v49, 0.0 }
  0xcd   : > { %v588_v52 = vpack.c.bf16 %v560_v51, %v559_v50 }
  0xcf   : > { %692 = vmatmul.bf16.gmra.mxu1 %v588_v52 }
  0xd0   : > { %v493_v54 = vpop.f32.mrf.mxu0 }
  0xd1   : > { %v494_v56 = vadd.f32 %v2288_v20, %v493_v54 }
  0xd3   : > { %1913 = vmatmul.msk.bf16.gmra.mxu0 %vm415_vm0, %v1995_v53  ;;  %v561_v59 = vmax.f32 %v494_v56, 0.0 }
  0xd8   : > { %v495_v57 = vpop.f32.mrf.mxu0 }
  0xd9   : > { %v496_v58 = vadd.f32 %v2288_v20, %v495_v57 }
  0xdb   : > { %v562_v60 = vmax.f32 %v496_v58, 0.0 }
  0xdd   : > { %v589_v61 = vpack.c.bf16 %v562_v60, %v561_v59 }
  0xdf   : > { %697 = vmatmul.bf16.gmra.mxu1 %v589_v61 }
  0xe0   : > { %v498_v62 = vpop.f32.mrf.mxu0 }
  0xe1   : > { %v499_v63 = vadd.f32 %v2288_v20, %v498_v62 }
  0xe3   : > { %v563_v3 = vmax.f32 %v499_v63, 0.0 }
  0xe8   : > { %v500_v0 = vpop.f32.mrf.mxu0 }
  0xe9   : > { %v501_v1 = vadd.f32 %v2288_v20, %v500_v0 }
  0xeb   : > { %v564_v4 = vmax.f32 %v501_v1, 0.0 }
  0xed   : > { %v590_v5 = vpack.c.bf16 %v564_v4, %v563_v3 }
  0xef   : > { %702 = vmatmul.bf16.gmra.mxu1 %v590_v5 }
  0xf0   : > { %v503_v7 = vpop.f32.mrf.mxu0 }
  0xf1   : > { %v504_v10 = vadd.f32 %v2288_v20, %v503_v7 }
  0xf3   : > { %v565_v14 = vmax.f32 %v504_v10, 0.0 }
  0xf8   : > { %v505_v11 = vpop.f32.mrf.mxu0 }
  0xf9   : > { %v506_v12 = vadd.f32 %v2288_v20, %v505_v11 }
  0xfb   : > { %v566_v15 = vmax.f32 %v506_v12, 0.0 }
  0xfd   : > { %v591_v16 = vpack.c.bf16 %v566_v15, %v565_v14 }
  0xff   : > { %707 = vmatmul.bf16.gmra.mxu1 %v591_v16  ;;  %v538_v16 = vpop.f32.mrf.mxu3 }
 0x100   : > { %v508_v18 = vpop.f32.mrf.mxu0 }
 0x101   : > { %v509_v22 = vadd.f32 %v2288_v20, %v508_v18 }
 0x103   : > { %v567_v25 = vmax.f32 %v509_v22, 0.0 }
 0x108   : > { %v510_v23 = vpop.f32.mrf.mxu0 }
 0x109   : > { %v511_v24 = vadd.f32 %v2288_v20, %v510_v23 }
 0x10b   : > { %v568_v26 = vmax.f32 %v511_v24, 0.0 }
 0x10d   : > { %v592_v27 = vpack.c.bf16 %v568_v26, %v567_v25 }
 0x10f   : > { %712 = vmatmul.bf16.gmra.mxu1 %v592_v27  ;;  %v540_v27 = vpop.f32.mrf.mxu3 }
 0x110   : > { %v513_v28 = vpop.f32.mrf.mxu0 }
 0x111   : > { %v514_v29 = vadd.f32 %v2288_v20, %v513_v28 }
 0x113   : > { %v569_v32 = vmax.f32 %v514_v29, 0.0 }
 0x118   : > { %v515_v30 = vpop.f32.mrf.mxu0 }
 0x119   : > { %v516_v31 = vadd.f32 %v2288_v20, %v515_v30 }
 0x11b   : > { %v570_v33 = vmax.f32 %v516_v31, 0.0 }
 0x11c   : > { %v678_v34 = vpop.f32.mrf.mxu1 }
 0x11d   : > { %v593_v35 = vpack.c.bf16 %v570_v33, %v569_v32  ;;  %v679_v38 = vadd.f32 %v2350_v36, %v678_v34  ;;  %v543_v34 = vpop.f32.mrf.mxu3 }
 0x11f   : > { %717 = vmatmul.bf16.gmra.mxu1 %v593_v35  ;;  %v758_v41 = vmax.f32 %v679_v38, 0.0  ;;  %v539_v35 = vadd.f32 %v2288_v20, %v538_v16 }
 0x120   : > { %v518_v37 = vpop.f32.mrf.mxu0 }
 0x121   : > { %v519_v42 = vadd.f32 %v2288_v20, %v518_v37  ;;  %v541_v37 = vadd.f32 %v2288_v20, %v540_v27 }
 0x123   : > { %v571_v47 = vmax.f32 %v519_v42, 0.0  ;;  %v580_v42 = vmax.f32 %v541_v37, 0.0 }
 0x124   : > { %v680_v39 = vpop.f32.mrf.mxu1 }
 0x125   : > { %v681_v40 = vadd.f32 %v2350_v36, %v680_v39 }
 0x127   : > { %v759_v43 = vmax.f32 %v681_v40, 0.0 }
 0x128   : > { %v520_v44 = vpop.f32.mrf.mxu0 }
 0x129   : > { %v521_v45 = vadd.f32 %v2288_v20, %v520_v44  ;;  %v790_v46 = vpack.c.bf16 %v759_v43, %v758_v41  ;;  %v579_v41 = vmax.f32 %v539_v35, 0.0 }
 0x12b   : > { %v572_v48 = vmax.f32 %v521_v45, 0.0  ;;  %882 = vmatmul.bf16.vlgmr.msra.gmra.mxu2 %v790_v46  ;;  %v598_v45 = vpack.c.bf16 %v580_v42, %v579_v41  ;;  %v545_v46 = vpop.f32.mrf.mxu3 }
 0x12c   : > { %v683_v49 = vpop.f32.mrf.mxu1 }
 0x12d   : > { %v594_v50 = vpack.c.bf16 %v572_v48, %v571_v47  ;;  %v684_v52 = vadd.f32 %v2350_v36, %v683_v49  ;;  %v544_v49 = vadd.f32 %v2288_v20, %v543_v34 }
 0x12f   : > { %722 = vmatmul.bf16.gmra.mxu1 %v594_v50  ;;  %v760_v55 = vmax.f32 %v684_v52, 0.0  ;;  %v546_v50 = vadd.f32 %v2288_v20, %v545_v46 }
 0x130   : > { %v523_v51 = vpop.f32.mrf.mxu0 }
 0x131   : > { %v524_v56 = vadd.f32 %v2288_v20, %v523_v51 }
 0x133   : > { %v573_v61 = vmax.f32 %v524_v56, 0.0  ;;  %v582_v56 = vmax.f32 %v546_v50, 0.0 }
 0x134   : > { %v685_v53 = vpop.f32.mrf.mxu1 }
 0x135   : > { %v686_v54 = vadd.f32 %v2350_v36, %v685_v53 }
 0x137   : > { %v761_v57 = vmax.f32 %v686_v54, 0.0  ;;  %v548_v54 = vpop.f32.mrf.mxu3 }
 0x138   : > { %v525_v58 = vpop.f32.mrf.mxu0 }
 0x139   : > { %v526_v59 = vadd.f32 %v2288_v20, %v525_v58  ;;  %v791_v60 = vpack.c.bf16 %v761_v57, %v760_v55  ;;  %v581_v55 = vmax.f32 %v544_v49, 0.0 }
 0x13b   : > { %v574_v62 = vmax.f32 %v526_v59, 0.0  ;;  %887 = vmatmul.bf16.gmra.mxu2 %v791_v60  ;;  %v599_v59 = vpack.c.bf16 %v582_v56, %v581_v55 }
 0x13c   : > { %v688_v63 = vpop.f32.mrf.mxu1 }
 0x13d   : > { %v595_v0 = vpack.c.bf16 %v574_v62, %v573_v61  ;;  %v689_v2 = vadd.f32 %v2350_v36, %v688_v63  ;;  %v549_v63 = vadd.f32 %v2288_v20, %v548_v54 }
 0x13f   : > { %727 = vmatmul.bf16.gmra.mxu1 %v595_v0  ;;  %v762_v5 = vmax.f32 %v689_v2, 0.0  ;;  %v550_v60 = vpop.f32.mrf.mxu3 }
 0x140   : > { %v528_v1 = vpop.f32.mrf.mxu0  ;;  %v551_v0 = vadd.f32 %v2288_v20, %v550_v60 }
 0x141   : > { %v529_v6 = vadd.f32 %v2288_v20, %v528_v1 }
 0x143   : > { %v575_v11 = vmax.f32 %v529_v6, 0.0 }
 0x144   : > { %v690_v3 = vpop.f32.mrf.mxu1 }
 0x145   : > { %v691_v4 = vadd.f32 %v2350_v36, %v690_v3 }
 0x147   : > { %v763_v7 = vmax.f32 %v691_v4, 0.0  ;;  %v583_v4 = vmax.f32 %v549_v63, 0.0 }
 0x148   : > { %v530_v8 = vpop.f32.mrf.mxu0 }
 0x149   : > { %v531_v9 = vadd.f32 %v2288_v20, %v530_v8  ;;  %v792_v10 = vpack.c.bf16 %v763_v7, %v762_v5  ;;  %v584_v5 = vmax.f32 %v551_v0, 0.0 }
 0x14b   : > { %v576_v12 = vmax.f32 %v531_v9, 0.0  ;;  %892 = vmatmul.bf16.gmra.mxu2 %v792_v10  ;;  %v600_v8 = vpack.c.bf16 %v584_v5, %v583_v4 }
 0x14c   : > { %v693_v13 = vpop.f32.mrf.mxu1 }
 0x14d   : > { %v596_v14 = vpack.c.bf16 %v576_v12, %v575_v11  ;;  %v694_v17 = vadd.f32 %v2350_v36, %v693_v13 }
 0x14f   : > { %732 = vmatmul.bf16.gmra.mxu1 %v596_v14  ;;  %v764_v21 = vmax.f32 %v694_v17, 0.0 }
 0x150   : > { %v533_v15 = vpop.f32.mrf.mxu0 }
 0x151   : > { %v534_v22 = vadd.f32 %v2288_v20, %v533_v15 }
 0x153   : > { %v577_v28 = vmax.f32 %v534_v22, 0.0  ;;  %v2387_v22 = vld [vmem:[%s2869_s6] ss:$0 sm:$0xff] }
 0x154   : > { %v695_v18 = vpop.f32.mrf.mxu1 }
 0x155   : > { %v696_v19 = vadd.f32 %v2350_v36, %v695_v18 }
 0x157   : > { %v765_v23 = vmax.f32 %v696_v19, 0.0 }
 0x158   : > { %v535_v24 = vpop.f32.mrf.mxu0 }
 0x159   : > { %v536_v25 = vadd.f32 %v2288_v20, %v535_v24  ;;  %v793_v26 = vpack.c.bf16 %v765_v23, %v764_v21 }
 0x15b   : > { %v578_v29 = vmax.f32 %v536_v25, 0.0  ;;  %897 = vmatmul.bf16.gmra.mxu2 %v793_v26 }
 0x15c   : > { %v698_v30 = vpop.f32.mrf.mxu1 }
 0x15d   : > { %v597_v31 = vpack.c.bf16 %v578_v29, %v577_v28  ;;  %v699_v32 = vadd.f32 %v2350_v36, %v698_v30 }
 0x15f   : > { %737 = vmatmul.bf16.vlgmr.msrb.gmra.mxu3 %v597_v31  ;;  %v766_v39 = vmax.f32 %v699_v32, 0.0 }
 0x164   : > { %v700_v33 = vpop.f32.mrf.mxu1 }
 0x165   : > { %v701_v38 = vadd.f32 %v2350_v36, %v700_v33 }
 0x167   : > { %v767_v40 = vmax.f32 %v701_v38, 0.0 }
 0x169   : > { %v794_v43 = vpack.c.bf16 %v767_v40, %v766_v39 }
 0x16b   : > { %902 = vmatmul.bf16.gmra.mxu2 %v794_v43 }
 0x16c   : > { %v703_v44 = vpop.f32.mrf.mxu1 }
 0x16d   : > { %v704_v47 = vadd.f32 %v2350_v36, %v703_v44 }
 0x16f   : > { %742 = vmatmul.bf16.gmra.mxu3 %v598_v45  ;;  %v768_v52 = vmax.f32 %v704_v47, 0.0 }
 0x174   : > { %v705_v48 = vpop.f32.mrf.mxu1 }
 0x175   : > { %v706_v51 = vadd.f32 %v2350_v36, %v705_v48 }
 0x177   : > { %v769_v53 = vmax.f32 %v706_v51, 0.0 }
 0x179   : > { %v795_v57 = vpack.c.bf16 %v769_v53, %v768_v52 }
 0x17b   : > { %907 = vmatmul.bf16.gmra.mxu2 %v795_v57 }
 0x17c   : > { %v708_v58 = vpop.f32.mrf.mxu1 }
 0x17d   : > { %v709_v61 = vadd.f32 %v2350_v36, %v708_v58 }
 0x17f   : > { %747 = vmatmul.bf16.gmra.mxu3 %v599_v59  ;;  %v770_v2 = vmax.f32 %v709_v61, 0.0 }
 0x184   : > { %v710_v62 = vpop.f32.mrf.mxu1 }
 0x185   : > { %v711_v1 = vadd.f32 %v2350_v36, %v710_v62 }
 0x187   : > { %v771_v3 = vmax.f32 %v711_v1, 0.0 }
 0x189   : > { %v796_v6 = vpack.c.bf16 %v771_v3, %v770_v2 }
 0x18b   : > { %912 = vmatmul.bf16.gmra.mxu2 %v796_v6 }
 0x18c   : > { %v713_v7 = vpop.f32.mrf.mxu1 }
 0x18d   : > { %v714_v9 = vadd.f32 %v2350_v36, %v713_v7 }
 0x18f   : > { %752 = vmatmul.bf16.gmra.mxu3 %v600_v8  ;;  %v772_v12 = vmax.f32 %v714_v9, 0.0 }
 0x194   : > { %v715_v10 = vpop.f32.mrf.mxu1 }
 0x195   : > { %v716_v11 = vadd.f32 %v2350_v36, %v715_v10 }
 0x197   : > { %v773_v13 = vmax.f32 %v716_v11, 0.0 }
 0x199   : > { %v797_v14 = vpack.c.bf16 %v773_v13, %v772_v12 }
 0x19b   : > { %917 = vmatmul.bf16.gmra.mxu2 %v797_v14 }
 0x19c   : > { %v718_v20 = vpop.f32.mrf.mxu1 }
 0x19d   : > { %v719_v15 = vadd.f32 %v2350_v36, %v718_v20 }
 0x19f   : > { %v774_v18 = vmax.f32 %v719_v15, 0.0 }
 0x1a4   : > { %v720_v16 = vpop.f32.mrf.mxu1 }
 0x1a5   : > { %v721_v17 = vadd.f32 %v2350_v36, %v720_v16 }
 0x1a7   : > { %v775_v19 = vmax.f32 %v721_v17, 0.0 }
 0x1a9   : > { %v798_v21 = vpack.c.bf16 %v775_v19, %v774_v18 }
 0x1ab   : > { %922 = vmatmul.bf16.gmra.mxu2 %v798_v21 }
 0x1ac   : > { %v723_v23 = vpop.f32.mrf.mxu1 }
 0x1ad   : > { %v724_v27 = vadd.f32 %v2350_v36, %v723_v23 }
 0x1ae   : > { %v883_v24 = vpop.f32.mrf.mxu2 }
 0x1af   : > { %v2390_v25 = vadd.f32 %v2387_v22, %v883_v24  ;;  %v776_v31 = vmax.f32 %v724_v27, 0.0 }
 0x1b1   : > { %v964_v26 = vsel %vm963_vm1, %v2390_v25, -inf }
 0x1b2   : > { %965 = vmax.xlane.f32.xlu0 %v964_v26 }
 0x1b4   : > { %v725_v28 = vpop.f32.mrf.mxu1 }
 0x1b5   : > { %v726_v29 = vadd.f32 %v2350_v36, %v725_v28 }
 0x1b6   : > { %v885_v30 = vpop.f32.mrf.mxu2 }
 0x1b7   : > { %v777_v32 = vmax.f32 %v726_v29, 0.0  ;;  %v2397_v33 = vadd.f32 %v2387_v22, %v885_v30 }
 0x1b9   : > { %v967_v34 = vsel %vm963_vm1, %v2397_v33, -inf  ;;  %v799_v35 = vpack.c.bf16 %v777_v32, %v776_v31 }
 0x1ba   : > { %968 = vmax.xlane.f32.xlu0 %v967_v34 }
 0x1bb   : > { %927 = vmatmul.bf16.gmra.mxu2 %v799_v35 }
 0x1bc   : > { %v728_v37 = vpop.f32.mrf.mxu1 }
 0x1bd   : > { %v729_v41 = vadd.f32 %v2350_v36, %v728_v37 }
 0x1be   : > { %v888_v38 = vpop.f32.mrf.mxu2 }
 0x1bf   : > { %v2402_v39 = vadd.f32 %v2387_v22, %v888_v38  ;;  %v778_v45 = vmax.f32 %v729_v41, 0.0 }
 0x1c1   : > { %v970_v40 = vsel %vm963_vm1, %v2402_v39, -inf }
 0x1c2   : > { %971 = vmax.xlane.f32.xlu1 %v970_v40 }
 0x1c4   : > { %v730_v42 = vpop.f32.mrf.mxu1 }
 0x1c5   : > { %v731_v43 = vadd.f32 %v2350_v36, %v730_v42 }
 0x1c6   : > { %v890_v44 = vpop.f32.mrf.mxu2 }
 0x1c7   : > { %v779_v46 = vmax.f32 %v731_v43, 0.0  ;;  %v2409_v47 = vadd.f32 %v2387_v22, %v890_v44 }
 0x1c9   : > { %v973_v48 = vsel %vm963_vm1, %v2409_v47, -inf  ;;  %v800_v49 = vpack.c.bf16 %v779_v46, %v778_v45 }
 0x1ca   : > { %974 = vmax.xlane.f32.xlu1 %v973_v48 }
 0x1cb   : > { %932 = vmatmul.bf16.gmra.mxu2 %v800_v49 }
 0x1cc   : > { %v733_v50 = vpop.f32.mrf.mxu1 }
 0x1cd   : > { %v734_v54 = vadd.f32 %v2350_v36, %v733_v50 }
 0x1ce   : > { %v893_v51 = vpop.f32.mrf.mxu2 }
 0x1cf   : > { %v2414_v52 = vadd.f32 %v2387_v22, %v893_v51  ;;  %v780_v58 = vmax.f32 %v734_v54, 0.0 }
 0x1d1   : > { %v976_v53 = vsel %vm963_vm1, %v2414_v52, -inf }
 0x1d2   : > { %977 = vmax.xlane.f32.xlu2 %v976_v53 }
 0x1d4   : > { %v735_v55 = vpop.f32.mrf.mxu1 }
 0x1d5   : > { %v736_v56 = vadd.f32 %v2350_v36, %v735_v55 }
 0x1d6   : > { %v895_v57 = vpop.f32.mrf.mxu2 }
 0x1d7   : > { %v781_v59 = vmax.f32 %v736_v56, 0.0  ;;  %v2421_v60 = vadd.f32 %v2387_v22, %v895_v57 }
 0x1d9   : > { %v979_v61 = vsel %vm963_vm1, %v2421_v60, -inf  ;;  %v801_v62 = vpack.c.bf16 %v781_v59, %v780_v58 }
 0x1da   : > { %980 = vmax.xlane.f32.xlu2 %v979_v61 }
 0x1db   : > { %937 = vmatmul.bf16.gmra.mxu2 %v801_v62 }
 0x1de   : > { %v898_v63 = vpop.f32.mrf.mxu2 }
 0x1df   : > { %v2426_v0 = vadd.f32 %v2387_v22, %v898_v63 }
 0x1e1   : > { %v982_v1 = vsel %vm963_vm1, %v2426_v0, -inf }
 0x1e2   : > { %v738_v2 = vpop.f32.mrf.mxu3  ;;  %983 = vmax.xlane.f32.xlu0 %v982_v1 }
 0x1e3   : > { %v739_v5 = vadd.f32 %v2350_v36, %v738_v2 }
 0x1e5   : > { %v782_v9 = vmax.f32 %v739_v5, 0.0 }
 0x1e6   : > { %v900_v3 = vpop.f32.mrf.mxu2 }
 0x1e7   : > { %v2431_v4 = vadd.f32 %v2387_v22, %v900_v3 }
 0x1e9   : > { %v985_v6 = vsel %vm963_vm1, %v2431_v4, -inf }
 0x1ea   : > { %v740_v7 = vpop.f32.mrf.mxu3  ;;  %986 = vmax.xlane.f32.xlu1 %v985_v6 }
 0x1eb   : > { %v741_v8 = vadd.f32 %v2350_v36, %v740_v7 }
 0x1ed   : > { %v783_v10 = vmax.f32 %v741_v8, 0.0 }
 0x1ee   : > { %v903_v11 = vpop.f32.mrf.mxu2 }
 0x1ef   : > { %v802_v12 = vpack.c.bf16 %v783_v10, %v782_v9  ;;  %v2438_v13 = vadd.f32 %v2387_v22, %v903_v11 }
 0x1f1   : > { %942 = vmatmul.bf16.vlgmr.msra.gmra.mxu3 %v802_v12  ;;  %v988_v14 = vsel %vm963_vm1, %v2438_v13, -inf }
 0x1f2   : > { %v743_v20 = vpop.f32.mrf.mxu3  ;;  %989 = vmax.xlane.f32.xlu2 %v988_v14 }
 0x1f3   : > { %v744_v17 = vadd.f32 %v2350_v36, %v743_v20 }
 0x1f5   : > { %v784_v23 = vmax.f32 %v744_v17, 0.0 }
 0x1f6   : > { %v905_v15 = vpop.f32.mrf.mxu2 }
 0x1f7   : > { %v2443_v16 = vadd.f32 %v2387_v22, %v905_v15 }
 0x1f9   : > { %v991_v18 = vsel %vm963_vm1, %v2443_v16, -inf }
 0x1fa   : > { %v745_v19 = vpop.f32.mrf.mxu3  ;;  %992 = vmax.xlane.f32.xlu0 %v991_v18 }
 0x1fb   : > { %v746_v21 = vadd.f32 %v2350_v36, %v745_v19 }
 0x1fd   : > { %v785_v24 = vmax.f32 %v746_v21, 0.0 }
 0x1fe   : > { %v908_v26 = vpop.f32.mrf.mxu2 }
 0x1ff   : > { %v2450_v27 = vadd.f32 %v2387_v22, %v908_v26  ;;  %v803_v28 = vpack.c.bf16 %v785_v24, %v784_v23 }
 0x201   : > { %947 = vmatmul.bf16.gmra.mxu3 %v803_v28  ;;  %v994_v29 = vsel %vm963_vm1, %v2450_v27, -inf }
 0x202   : > { %v748_v30 = vpop.f32.mrf.mxu3  ;;  %995 = vmax.xlane.f32.xlu1 %v994_v29 }
 0x203   : > { %v749_v34 = vadd.f32 %v2350_v36, %v748_v30 }
 0x205   : > { %v786_v40 = vmax.f32 %v749_v34, 0.0 }
 0x206   : > { %v910_v31 = vpop.f32.mrf.mxu2 }
 0x207   : > { %v2455_v32 = vadd.f32 %v2387_v22, %v910_v31 }
 0x209   : > { %v997_v35 = vsel %vm963_vm1, %v2455_v32, -inf }
 0x20a   : > { %v750_v37 = vpop.f32.mrf.mxu3  ;;  %998 = vmax.xlane.f32.xlu2 %v997_v35 }
 0x20b   : > { %v751_v38 = vadd.f32 %v2350_v36, %v750_v37 }
 0x20d   : > { %v787_v41 = vmax.f32 %v751_v38, 0.0 }
 0x20e   : > { %v913_v42 = vpop.f32.mrf.mxu2 }
 0x20f   : > { %v2462_v43 = vadd.f32 %v2387_v22, %v913_v42  ;;  %v804_v44 = vpack.c.bf16 %v787_v41, %v786_v40 }
 0x211   : > { %952 = vmatmul.bf16.gmra.mxu3 %v804_v44  ;;  %v1000_v45 = vsel %vm963_vm1, %v2462_v43, -inf }
 0x212   : > { %v753_v46 = vpop.f32.mrf.mxu3  ;;  %1001 = vmax.xlane.f32.xlu0 %v1000_v45 }
 0x213   : > { %v754_v50 = vadd.f32 %v2350_v36, %v753_v46 }
 0x215   : > { %v788_v55 = vmax.f32 %v754_v50, 0.0 }
 0x216   : > { %v915_v48 = vpop.f32.mrf.mxu2 }
 0x217   : > { %v2467_v49 = vadd.f32 %v2387_v22, %v915_v48 }
 0x219   : > { %v1003_v51 = vsel %vm963_vm1, %v2467_v49, -inf }
 0x21a   : > { %v755_v53 = vpop.f32.mrf.mxu3  ;;  %1004 = vmax.xlane.f32.xlu1 %v1003_v51 }
 0x21b   : > { %v756_v54 = vadd.f32 %v2350_v36, %v755_v53 }
 0x21d   : > { %v789_v56 = vmax.f32 %v756_v54, 0.0 }
 0x21e   : > { %v918_v57 = vpop.f32.mrf.mxu2 }
 0x21f   : > { %v2474_v58 = vadd.f32 %v2387_v22, %v918_v57  ;;  %v805_v59 = vpack.c.bf16 %v789_v56, %v788_v55 }
 0x221   : > { %957 = vmatmul.bf16.gmra.mxu3 %v805_v59  ;;  %v1006_v61 = vsel %vm963_vm1, %v2474_v58, -inf }
 0x222   : > { %1007 = vmax.xlane.f32.xlu2 %v1006_v61 }
 0x225   : > { %v966_v62 = vpop.xlane.xlu0 %965 }
 0x226   : > { %v1060_v63 = vsub.f32 %v2390_v25, %v966_v62  ;;  %v920_v1 = vpop.f32.mrf.mxu2 }
 0x227   : > { %v2480_v2 = vadd.f32 %v2387_v22, %v920_v1 }
 0x228   : > { %v1092_v36 = vmul.f32 1.442695, %v1060_v63 }
 0x229   : > { %v1009_v3 = vsel %vm963_vm1, %v2480_v2, -inf }
 0x22a   : > { %2046 = vpow2.f32 %v1092_v36  ;;  %1010 = vmax.xlane.f32.xlu0 %v1009_v3 }
 0x22d   : > { %v969_v5 = vpop.xlane.xlu0 %968 }
 0x22e   : > { %v1061_v6 = vsub.f32 %v2397_v33, %v969_v5  ;;  %v923_v7 = vpop.f32.mrf.mxu2 }
 0x22f   : > { %v2486_v8 = vadd.f32 %v2387_v22, %v923_v7 }
 0x230   : > { %v2488_v9 = vpop.eup %2046  ;;  %v1094_v25 = vmul.f32 1.442695, %v1061_v6 }
 0x231   : > { %v1012_v10 = vsel %vm963_vm1, %v2486_v8, -inf  ;;  %v1156_v11 = vsel %vm963_vm1, %v2488_v9, 0.0 }
 0x232   : > { %2048 = vpow2.f32 %v1094_v25  ;;  %1013 = vmax.xlane.f32.xlu1 %v1012_v10  ;;  %1157 = vadd.xlane.f32.xlu2 %v1156_v11 }
 0x235   : > { %v972_v12 = vpop.xlane.xlu1 %971 }
 0x236   : > { %v1062_v14 = vsub.f32 %v2402_v39, %v972_v12  ;;  %v925_v33 = vpop.f32.mrf.mxu2 }
 0x237   : > { %v2496_v20 = vadd.f32 %v2387_v22, %v925_v33 }
 0x238   : > { %v2498_v15 = vpop.eup %2048  ;;  %v1096_v17 = vmul.f32 1.442695, %v1062_v14 }
 0x239   : > { %v1015_v18 = vsel %vm963_vm1, %v2496_v20, -inf  ;;  %v1159_v19 = vsel %vm963_vm1, %v2498_v15, 0.0 }
 0x23a   : > { %2050 = vpow2.f32 %v1096_v17  ;;  %1016 = vmax.xlane.f32.xlu2 %v1015_v18  ;;  %1160 = vadd.xlane.f32.xlu0 %v1159_v19 }
 0x23d   : > { %v975_v21 = vpop.xlane.xlu1 %974 }
 0x23e   : > { %v1063_v23 = vsub.f32 %v2409_v47, %v975_v21  ;;  %v928_v39 = vpop.f32.mrf.mxu2 }
 0x23f   : > { %v2506_v24 = vadd.f32 %v2387_v22, %v928_v39 }
 0x240   : > { %v2508_v26 = vpop.eup %2050  ;;  %v1098_v28 = vmul.f32 1.442695, %v1063_v23 }
 0x241   : > { %v1162_v29 = vsel %vm963_vm1, %v2508_v26, 0.0  ;;  %v1018_v30 = vsel %vm963_vm1, %v2506_v24, -inf }
 0x242   : > { %2052 = vpow2.f32 %v1098_v28  ;;  %1163 = vadd.xlane.f32.xlu1 %v1162_v29  ;;  %1019 = vmax.xlane.f32.xlu0 %v1018_v30 }
 0x245   : > { %v978_v31 = vpop.xlane.xlu2 %977 }
 0x246   : > { %v1064_v34 = vsub.f32 %v2414_v52, %v978_v31  ;;  %v930_v47 = vpop.f32.mrf.mxu2 }
 0x247   : > { %v2516_v35 = vadd.f32 %v2387_v22, %v930_v47 }
 0x248   : > { %v2518_v37 = vpop.eup %2052  ;;  %v1100_v38 = vmul.f32 1.442695, %v1064_v34 }
 0x249   : > { %v1021_v40 = vsel %vm963_vm1, %v2516_v35, -inf  ;;  %v1165_v41 = vsel %vm963_vm1, %v2518_v37, 0.0 }
 0x24a   : > { %2054 = vpow2.f32 %v1100_v38  ;;  %1022 = vmax.xlane.f32.xlu1 %v1021_v40  ;;  %1166 = vadd.xlane.f32.xlu2 %v1165_v41 }
 0x24d   : > { %v981_v42 = vpop.xlane.xlu2 %980 }
 0x24e   : > { %v1065_v44 = vsub.f32 %v2421_v60, %v981_v42  ;;  %v933_v52 = vpop.f32.mrf.mxu2 }
 0x24f   : > { %v2526_v45 = vadd.f32 %v2387_v22, %v933_v52 }
 0x250   : > { %v2528_v46 = vpop.eup %2054  ;;  %v1102_v48 = vmul.f32 1.442695, %v1065_v44 }
 0x251   : > { %v1024_v50 = vsel %vm963_vm1, %v2526_v45, -inf  ;;  %v1168_v51 = vsel %vm963_vm1, %v2528_v46, 0.0 }
 0x252   : > { %2056 = vpow2.f32 %v1102_v48  ;;  %1025 = vmax.xlane.f32.xlu2 %v1024_v50  ;;  %1169 = vadd.xlane.f32.xlu0 %v1168_v51 }
 0x255   : > { %v984_v53 = vpop.xlane.xlu0 %983 }
 0x256   : > { %v1066_v54 = vsub.f32 %v2426_v0, %v984_v53  ;;  %v935_v60 = vpop.f32.mrf.mxu2 }
 0x257   : > { %v2536_v55 = vadd.f32 %v2387_v22, %v935_v60 }
 0x258   : > { %v2538_v56 = vpop.eup %2056  ;;  %v1104_v57 = vmul.f32 1.442695, %v1066_v54 }
 0x259   : > { %v1171_v59 = vsel %vm963_vm1, %v2538_v56, 0.0  ;;  %v1027_v61 = vsel %vm963_vm1, %v2536_v55, -inf }
 0x25a   : > { %2058 = vpow2.f32 %v1104_v57  ;;  %1172 = vadd.xlane.f32.xlu1 %v1171_v59  ;;  %1028 = vmax.xlane.f32.xlu0 %v1027_v61 }
 0x25d   : > { %v987_v62 = vpop.xlane.xlu1 %986 }
 0x25e   : > { %v1067_v63 = vsub.f32 %v2431_v4, %v987_v62  ;;  %v938_v0 = vpop.f32.mrf.mxu2 }
 0x25f   : > { %v2546_v1 = vadd.f32 %v2387_v22, %v938_v0 }
 0x260   : > { %v2548_v36 = vpop.eup %2058  ;;  %v1106_v3 = vmul.f32 1.442695, %v1067_v63 }
 0x261   : > { %v1030_v5 = vsel %vm963_vm1, %v2546_v1, -inf  ;;  %v1174_v6 = vsel %vm963_vm1, %v2548_v36, 0.0 }
 0x262   : > { %2060 = vpow2.f32 %v1106_v3  ;;  %1031 = vmax.xlane.f32.xlu1 %v1030_v5  ;;  %1175 = vadd.xlane.f32.xlu2 %v1174_v6 }
 0x265   : > { %v990_v7 = vpop.xlane.xlu2 %989 }
 0x266   : > { %v1068_v25 = vsub.f32 %v2438_v13, %v990_v7  ;;  %v940_v4 = vpop.f32.mrf.mxu2 }
 0x267   : > { %v2556_v10 = vadd.f32 %v2387_v22, %v940_v4 }
 0x268   : > { %v2558_v11 = vpop.eup %2060  ;;  %v1108_v12 = vmul.f32 1.442695, %v1068_v25 }
 0x269   : > { %v1177_v14 = vsel %vm963_vm1, %v2558_v11, 0.0  ;;  %v1033_v33 = vsel %vm963_vm1, %v2556_v10, -inf }
 0x26a   : > { %2062 = vpow2.f32 %v1108_v12  ;;  %1178 = vadd.xlane.f32.xlu0 %v1177_v14  ;;  %1034 = vmax.xlane.f32.xlu2 %v1033_v33 }
 0x26d   : > { %v993_v17 = vpop.xlane.xlu0 %992 }
 0x26e   : > { %v1069_v18 = vsub.f32 %v2443_v16, %v993_v17 }
 0x270   : > { %v2565_v13 = vpop.eup %2062  ;;  %v1110_v19 = vmul.f32 1.442695, %v1069_v18 }
 0x271   : > { %v1180_v21 = vsel %vm963_vm1, %v2565_v13, 0.0 }
 0x272   : > { %2064 = vpow2.f32 %v1110_v19  ;;  %1181 = vadd.xlane.f32.xlu1 %v1180_v21 }
 0x274   : > { %v943_v23 = vpop.f32.mrf.mxu3 }
 0x275   : > { %v2570_v39 = vadd.f32 %v2387_v22, %v943_v23  ;;  %v996_v28 = vpop.xlane.xlu1 %995 }
 0x276   : > { %v1070_v29 = vsub.f32 %v2450_v27, %v996_v28 }
 0x277   : > { %v1036_v30 = vsel %vm963_vm1, %v2570_v39, -inf }
 0x278   : > { %v2575_v31 = vpop.eup %2064  ;;  %v1112_v16 = vmul.f32 1.442695, %v1070_v29  ;;  %1037 = vmax.xlane.f32.xlu0 %v1036_v30 }
 0x279   : > { %v1183_v34 = vsel %vm963_vm1, %v2575_v31, 0.0 }
 0x27a   : > { %2066 = vpow2.f32 %v1112_v16  ;;  %1184 = vadd.xlane.f32.xlu2 %v1183_v34 }
 0x27c   : > { %v945_v47 = vpop.f32.mrf.mxu3 }
 0x27d   : > { %v2580_v38 = vadd.f32 %v2387_v22, %v945_v47  ;;  %v999_v60 = vpop.xlane.xlu2 %998 }
 0x27e   : > { %v1071_v33 = vsub.f32 %v2455_v32, %v999_v60 }
 0x27f   : > { %v1039_v40 = vsel %vm963_vm1, %v2580_v38, -inf }
 0x280   : > { %v2584_v27 = vpop.eup %2066  ;;  %1040 = vmax.xlane.f32.xlu1 %v1039_v40  ;;  %v1114_v28 = vmul.f32 1.442695, %v1071_v33 }
 0x281   : > { %v1186_v41 = vsel %vm963_vm1, %v2584_v27, 0.0 }
 0x282   : > { %1187 = vadd.xlane.f32.xlu0 %v1186_v41 }
 0x284   : > { %v948_v42 = vpop.f32.mrf.mxu3 }
 0x285   : > { %v2589_v44 = vadd.f32 %v2387_v22, %v948_v42  ;;  %v1002_v53 = vpop.xlane.xlu0 %1001 }
 0x286   : > { %v1072_v59 = vsub.f32 %v2462_v43, %v1002_v53 }
 0x287   : > { %v1042_v52 = vsel %vm963_vm1, %v2589_v44, -inf }
 0x288   : > { %1043 = vmax.xlane.f32.xlu2 %v1042_v52  ;;  %v1116_v62 = vmul.f32 1.442695, %v1072_v59 }
 0x28a   : > { %2068 = vpow2.f32 %v1116_v62 }
 0x28c   : > { %v950_v48 = vpop.f32.mrf.mxu3 }
 0x28d   : > { %v2594_v50 = vadd.f32 %v2387_v22, %v950_v48  ;;  %v1005_v63 = vpop.xlane.xlu1 %1004 }
 0x28e   : > { %v1073_v3 = vsub.f32 %v2467_v49, %v1005_v63 }
 0x28f   : > { %v1045_v51 = vsel %vm963_vm1, %v2594_v50, -inf }
 0x290   : > { %1046 = vmax.xlane.f32.xlu0 %v1045_v51  ;;  %v1118_v4 = vmul.f32 1.442695, %v1073_v3  ;;  %v2611_v14 = vpop.eup %2068 }
 0x291   : > { %v1192_v23 = vsel %vm963_vm1, %v2611_v14, 0.0 }
 0x292   : > { %2070 = vpow2.f32 %v1118_v4 }
 0x294   : > { %v953_v54 = vpop.f32.mrf.mxu3 }
 0x295   : > { %v2599_v57 = vadd.f32 %v2387_v22, %v953_v54  ;;  %v1008_v5 = vpop.xlane.xlu2 %1007 }
 0x296   : > { %v1074_v16 = vsub.f32 %v2474_v58, %v1008_v5 }
 0x297   : > { %v1048_v61 = vsel %vm963_vm1, %v2599_v57, -inf }
 0x298   : > { %1049 = vmax.xlane.f32.xlu1 %v1048_v61  ;;  %v2622_v29 = vpop.eup %2070  ;;  %v1120_v51 = vmul.f32 1.442695, %v1074_v16 }
 0x299   : > { %v1195_v48 = vsel %vm963_vm1, %v2622_v29, 0.0 }
 0x29c   : > { %v955_v0 = vpop.f32.mrf.mxu3 }
 0x29d   : > { %v2606_v6 = vadd.f32 %v2387_v22, %v955_v0  ;;  %v1011_v7 = vpop.xlane.xlu0 %1010 }
 0x29e   : > { %v1075_v25 = vsub.f32 %v2480_v2, %v1011_v7 }
 0x29f   : > { %v1051_v43 = vsel %vm963_vm1, %v2606_v6, -inf }
 0x2a0   : > { %1052 = vmax.xlane.f32.xlu2 %v1051_v43  ;;  %v1122_v12 = vmul.f32 1.442695, %v1075_v25 }
 0x2a4   : > { %v958_v17 = vpop.f32.mrf.mxu3 }
 0x2a5   : > { %v2615_v49 = vadd.f32 %v2387_v22, %v958_v17  ;;  %v1014_v18 = vpop.xlane.xlu1 %1013  ;;  %v1158_v19 = vpop.xlane.xlu2 %1157 }
 0x2a6   : > { %v1076_v21 = vsub.f32 %v2486_v8, %v1014_v18  ;;  %2072 = vrcp.f32 %v1158_v19  ;;  %v1263_v58 = vand.u32 2147483648, %v1158_v19  ;;  %vm1257_vm3 = vweird.f32 %v1158_v19 }
 0x2a7   : > { %2074 = vpow2.f32 %v1122_v12  ;;  %v1054_v2 = vsel %vm963_vm1, %v2615_v49, -inf }
 0x2a8   : > { %1055 = vmax.xlane.f32.xlu0 %v1054_v2  ;;  %1193 = vadd.xlane.f32.xlu2 %v1192_v23  ;;  %v1124_v32 = vmul.f32 1.442695, %v1076_v21  ;;  %2076 = vpow2.f32 %v1114_v28  ;;  %v1264_v0 = vor.u32 1.1754944e-38, %v1263_v58 }
 0x2aa   : > { %2078 = vpow2.f32 %v1124_v32 }
 0x2ac   : > { %v2073_v30 = vpop.eup %2072  ;;  %v960_v34 = vpop.f32.mrf.mxu3 }
 0x2ad   : > { %v2625_v8 = vpop.eup %2074  ;;  %v1253_v47 = vmul.f32 %v2073_v30, %v1158_v19  ;;  %v2628_v40 = vadd.f32 %v2387_v22, %v960_v34  ;;  %v1161_v41 = vpop.xlane.xlu0 %1160  ;;  %vm1258_vm2 = vweird.f32 %v2073_v30  ;;  %v1261_v22 = vand.u32 2147483647, %v1158_v19 }
 0x2ae   : > { %2080 = vrcp.f32 %v1161_v41  ;;  %v1201_v53 = vsel %vm963_vm1, %v2625_v8, 0.0  ;;  %v2636_v60 = vpop.eup %2076  ;;  %v1017_v59 = vpop.xlane.xlu2 %1016  ;;  %vm1259_vm4 = vmor %vm1257_vm3, %vm1258_vm2  ;;  %v1276_v19 = vand.u32 2147483647, %v1161_v41  ;;  %v1278_v21 = vand.u32 2147483648, %v1161_v41 }
 0x2af   : > { %v1254_v42 = vsub.f32 1.0, %v1253_v47  ;;  %v1057_v52 = vsel %vm963_vm1, %v2628_v40, -inf  ;;  %2082 = vpow2.f32 %v1120_v51  ;;  %vm1262_vm5 = vcmp.eq.f32.partialorder %v1261_v22, 8.507059e+37 }
 0x2b0   : > { %1058 = vmax.xlane.f32.xlu1 %v1057_v52  ;;  %1196 = vadd.xlane.f32.xlu0 %v1195_v48  ;;  %v2638_v61 = vpop.eup %2078  ;;  %v1077_v5 = vsub.f32 %v2496_v20, %v1017_v59  ;;  %v1189_v12 = vsel %vm963_vm1, %v2636_v60, 0.0  ;;  %vm1272_vm7 = vweird.f32 %v1161_v41  ;;  %vm1277_vm9 = vcmp.eq.f32.partialorder %v1276_v19, 8.507059e+37 }
 0x2b1   : > { %v1255_v54 = vmul.f32 %v2073_v30, %v1254_v42  ;;  %1202 = vadd.xlane.f32.xlu2 %v1201_v53  ;;  %v1204_v20 = vsel %vm963_vm1, %v2638_v61, 0.0 }
 0x2b2   : > { %v1126_v2 = vmul.f32 1.442695, %v1077_v5 }
 0x2b3   : > { %v1256_v62 = vadd.f32 %v2073_v30, %v1255_v54 }
 0x2b4   : > { %v2081_v63 = vpop.eup %2080 }
 0x2b5   : > { %v1260_v3 = vsel %vm1259_vm4, %v2073_v30, %v1256_v62  ;;  %v1268_v7 = vmul.f32 %v2081_v63, %v1161_v41  ;;  %v1164_v25 = vpop.xlane.xlu1 %1163  ;;  %v1020_v43 = vpop.xlane.xlu0 %1019  ;;  %vm1273_vm6 = vweird.f32 %v2081_v63 }
 0x2b6   : > { %v1265_v4 = vsel %vm1262_vm5, %v1264_v0, %v1260_v3  ;;  %2084 = vrcp.f32 %v1164_v25  ;;  %v1078_v18 = vsub.f32 %v2506_v24, %v1020_v43  ;;  %v2655_v32 = vpop.eup %2082  ;;  %vm1274_vm8 = vmor %vm1272_vm7, %vm1273_vm6  ;;  %v1279_v24 = vor.u32 1.1754944e-38, %v1278_v21 }
 0x2b7   : > { %v1266_v33 = vmul.f32 %v2488_v9, %v1265_v4  ;;  %v1269_v17 = vsub.f32 1.0, %v1268_v7  ;;  %v1198_v41 = vsel %vm963_vm1, %v2655_v32, 0.0  ;;  %v1293_v53 = vand.u32 2147483648, %v1164_v25 }
 0x2b8   : > { %1190 = vadd.xlane.f32.xlu1 %v1189_v12  ;;  %1205 = vadd.xlane.f32.xlu0 %v1204_v20  ;;  %v1128_v28 = vmul.f32 1.442695, %v1078_v18  ;;  %v1291_v62 = vand.u32 2147483647, %v1164_v25  ;;  %vm1287_vm11 = vweird.f32 %v1164_v25 }
 0x2b9   : > { %1732 = vst.msk [vmem:[%s2645_s11] sm:$0xff] %vm963_vm1, %v1266_v33  ;;  %v1270_v23 = vmul.f32 %v2081_v63, %v1269_v17  ;;  %v1294_v3 = vor.u32 1.1754944e-38, %v1293_v53 }
 0x2ba   : > { %2086 = vpow2.f32 %v1128_v28  ;;  %vm1292_vm13 = vcmp.eq.f32.partialorder %v1291_v62, 8.507059e+37 }
 0x2bb   : > { %v1271_v30 = vadd.f32 %v2081_v63, %v1270_v23  ;;  %2088 = vpow2.f32 %v1126_v2 }
 0x2bc   : > { %v2085_v9 = vpop.eup %2084 }
 0x2bd   : > { %v1275_v16 = vsel %vm1274_vm8, %v2081_v63, %v1271_v30  ;;  %v1283_v34 = vmul.f32 %v2085_v9, %v1164_v25  ;;  %v1023_v47 = vpop.xlane.xlu1 %1022  ;;  %v1167_v42 = vpop.xlane.xlu2 %1166  ;;  %vm1288_vm10 = vweird.f32 %v2085_v9 }
 0x2be   : > { %v1280_v52 = vsel %vm1277_vm9, %v1279_v24, %v1275_v16  ;;  %v1079_v48 = vsub.f32 %v2516_v35, %v1023_v47  ;;  %2090 = vrcp.f32 %v1167_v42  ;;  %vm1289_vm12 = vmor %vm1287_vm11, %vm1288_vm10  ;;  %v1308_v19 = vand.u32 2147483648, %v1167_v42 }
 0x2bf   : > { %v1281_v51 = vmul.f32 %v2498_v15, %v1280_v52  ;;  %v1284_v58 = vsub.f32 1.0, %v1283_v34  ;;  %v1306_v23 = vand.u32 2147483647, %v1167_v42  ;;  %vm1302_vm15 = vweird.f32 %v1167_v42 }
 0x2c0   : > { %v1130_v54 = vmul.f32 1.442695, %v1079_v48  ;;  %1199 = vadd.xlane.f32.xlu1 %v1198_v41  ;;  %v2661_v22 = vpop.eup %2086  ;;  %v1309_v30 = vor.u32 1.1754944e-38, %v1308_v19 }
 0x2c1   : > { %1733 = vst.msk [vmem:[%s2645_s11 + $0x8] sm:$0xff] %vm963_vm1, %v1281_v51  ;;  %v1285_v59 = vmul.f32 %v2085_v9, %v1284_v58  ;;  %v1210_v35 = vsel %vm963_vm1, %v2661_v22, 0.0  ;;  %v2667_v63 = vpop.eup %2088  ;;  %vm1307_vm2 = vcmp.eq.f32.partialorder %v1306_v23, 8.507059e+37 }
 0x2c2   : > { %2092 = vpow2.f32 %v1130_v54  ;;  %1211 = vadd.xlane.f32.xlu2 %v1210_v35  ;;  %v1207_v25 = vsel %vm963_vm1, %v2667_v63, 0.0 }
 0x2c3   : > { %v1286_v15 = vadd.f32 %v2085_v9, %v1285_v59 }
 0x2c4   : > { %v2091_v0 = vpop.eup %2090 }
 0x2c5   : > { %v1290_v5 = vsel %vm1289_vm12, %v2085_v9, %v1286_v15  ;;  %v1298_v7 = vmul.f32 %v2091_v0, %v1167_v42  ;;  %v1026_v43 = vpop.xlane.xlu2 %1025  ;;  %v1170_v4 = vpop.xlane.xlu0 %1169  ;;  %vm1303_vm14 = vweird.f32 %v2091_v0 }
 0x2c6   : > { %v1295_v12 = vsel %vm1292_vm13, %v1294_v3, %v1290_v5  ;;  %v1080_v33 = vsub.f32 %v2526_v45, %v1026_v43  ;;  %2094 = vrcp.f32 %v1170_v4  ;;  %vm1304_vm0 = vmor %vm1302_vm15, %vm1303_vm14  ;;  %v1321_v41 = vand.u32 2147483647, %v1170_v4 }
 0x2c7   : > { %v1296_v17 = vmul.f32 %v2508_v26, %v1295_v12  ;;  %v1299_v18 = vsub.f32 1.0, %v1298_v7  ;;  %v1323_v42 = vand.u32 2147483648, %v1170_v4  ;;  %vm1317_vm4 = vweird.f32 %v1170_v4 }
 0x2c8   : > { %v2673_v20 = vpop.eup %2092  ;;  %v1132_v21 = vmul.f32 1.442695, %v1080_v33  ;;  %1208 = vadd.xlane.f32.xlu1 %v1207_v25  ;;  %vm1322_vm6 = vcmp.eq.f32.partialorder %v1321_v41, 8.507059e+37 }
 0x2c9   : > { %1734 = vst.msk [vmem:[%s2645_s11 + $0x10] sm:$0xff] %vm963_vm1, %v1296_v17  ;;  %v1300_v2 = vmul.f32 %v2091_v0, %v1299_v18  ;;  %v1213_v45 = vsel %vm963_vm1, %v2673_v20, 0.0 }
 0x2ca   : > { %2096 = vpow2.f32 %v1132_v21  ;;  %1214 = vadd.xlane.f32.xlu0 %v1213_v45 }
 0x2cb   : > { %v1301_v26 = vadd.f32 %v2091_v0, %v1300_v2 }
 0x2cc   : > { %v2095_v28 = vpop.eup %2094 }
 0x2cd   : > { %v1305_v9 = vsel %vm1304_vm0, %v2091_v0, %v1301_v26  ;;  %v1313_v24 = vmul.f32 %v2095_v28, %v1170_v4  ;;  %v1173_v16 = vpop.xlane.xlu1 %1172  ;;  %v1029_v34 = vpop.xlane.xlu0 %1028  ;;  %vm1318_vm3 = vweird.f32 %v2095_v28 }
 0x2ce   : > { %v1310_v47 = vsel %vm1307_vm2, %v1309_v30, %v1305_v9  ;;  %2098 = vrcp.f32 %v1173_v16  ;;  %v1081_v51 = vsub.f32 %v2536_v55, %v1029_v34  ;;  %vm1319_vm5 = vmor %vm1317_vm4, %vm1318_vm3  ;;  %v1324_v55 = vor.u32 1.1754944e-38, %v1323_v42 }
 0x2cf   : > { %v1311_v52 = vmul.f32 %v2518_v37, %v1310_v47  ;;  %v1314_v48 = vsub.f32 1.0, %v1313_v24  ;;  %v1338_v33 = vand.u32 2147483648, %v1173_v16  ;;  %v1336_v25 = vand.u32 2147483647, %v1173_v16 }
 0x2d0   : > { %v2681_v58 = vpop.eup %2096  ;;  %v1134_v54 = vmul.f32 1.442695, %v1081_v51  ;;  %vm1332_vm8 = vweird.f32 %v1173_v16 }
 0x2d1   : > { %1735 = vst.msk [vmem:[%s2645_s11 + $0x18] sm:$0xff] %vm963_vm1, %v1311_v52  ;;  %v1315_v53 = vmul.f32 %v2095_v28, %v1314_v48  ;;  %v1216_v59 = vsel %vm963_vm1, %v2681_v58, 0.0  ;;  %vm1337_vm10 = vcmp.eq.f32.partialorder %v1336_v25, 8.507059e+37 }
 0x2d2   : > { %1217 = vadd.xlane.f32.xlu1 %v1216_v59  ;;  %2100 = vpow2.f32 %v1134_v54 }
 0x2d3   : > { %v1316_v62 = vadd.f32 %v2095_v28, %v1315_v53 }
 0x2d4   : > { %v2099_v37 = vpop.eup %2098 }
 0x2d5   : > { %v1320_v35 = vsel %vm1319_vm5, %v2095_v28, %v1316_v62  ;;  %v1328_v15 = vmul.f32 %v2099_v37, %v1173_v16  ;;  %v1032_v0 = vpop.xlane.xlu1 %1031  ;;  %v1176_v3 = vpop.xlane.xlu2 %1175  ;;  %vm1333_vm7 = vweird.f32 %v2099_v37 }
 0x2d6   : > { %v1325_v5 = vsel %vm1322_vm6, %v1324_v55, %v1320_v35  ;;  %v1082_v7 = vsub.f32 %v2546_v1, %v1032_v0  ;;  %2102 = vrcp.f32 %v1176_v3  ;;  %vm1334_vm9 = vmor %vm1332_vm8, %vm1333_vm7  ;;  %v1353_v16 = vand.u32 2147483648, %v1176_v3 }
 0x2d7   : > { %v1326_v43 = vmul.f32 %v2528_v46, %v1325_v5  ;;  %v1329_v12 = vsub.f32 1.0, %v1328_v15  ;;  %v1339_v46 = vor.u32 1.1754944e-38, %v1338_v33  ;;  %v1351_v48 = vand.u32 2147483647, %v1176_v3 }
 0x2d8   : > { %v1136_v17 = vmul.f32 1.442695, %v1082_v7  ;;  %v2689_v4 = vpop.eup %2100  ;;  %vm1347_vm12 = vweird.f32 %v1176_v3 }
 0x2d9   : > { %1736 = vst.msk [vmem:[%s2645_s11 + $0x20] sm:$0xff] %vm963_vm1, %v1326_v43  ;;  %v1330_v18 = vmul.f32 %v2099_v37, %v1329_v12  ;;  %v1219_v19 = vsel %vm963_vm1, %v2689_v4, 0.0  ;;  %vm1352_vm14 = vcmp.eq.f32.partialorder %v1351_v48, 8.507059e+37 }
 0x2da   : > { %2104 = vpow2.f32 %v1136_v17  ;;  %1220 = vadd.xlane.f32.xlu2 %v1219_v19 }
 0x2db   : > { %v1331_v21 = vadd.f32 %v2099_v37, %v1330_v18 }
 0x2dc   : > { %v2103_v1 = vpop.eup %2102 }
 0x2dd   : > { %v1335_v2 = vsel %vm1334_vm9, %v2099_v37, %v1331_v21  ;;  %v1343_v23 = vmul.f32 %v2103_v1, %v1176_v3  ;;  %v1035_v45 = vpop.xlane.xlu2 %1034  ;;  %v1179_v26 = vpop.xlane.xlu0 %1178  ;;  %vm1348_vm11 = vweird.f32 %v2103_v1 }
 0x2de   : > { %v1340_v28 = vsel %vm1337_vm10, %v1339_v46, %v1335_v2  ;;  %v1083_v30 = vsub.f32 %v2556_v10, %v1035_v45  ;;  %2106 = vrcp.f32 %v1179_v26  ;;  %vm1349_vm13 = vmor %vm1347_vm12, %vm1348_vm11  ;;  %v1368_v35 = vand.u32 2147483648, %v1179_v26 }
 0x2df   : > { %v1341_v9 = vmul.f32 %v2538_v56, %v1340_v28  ;;  %v1344_v24 = vsub.f32 1.0, %v1343_v23  ;;  %v1354_v56 = vor.u32 1.1754944e-38, %v1353_v16  ;;  %v1366_v0 = vand.u32 2147483647, %v1179_v26 }
 0x2e0   : > { %v2697_v34 = vpop.eup %2104  ;;  %v1138_v47 = vmul.f32 1.442695, %v1083_v30  ;;  %vm1362_vm0 = vweird.f32 %v1179_v26 }
 0x2e1   : > { %1737 = vst.msk [vmem:[%s2645_s11 + $0x28] sm:$0xff] %vm963_vm1, %v1341_v9  ;;  %v1345_v52 = vmul.f32 %v2103_v1, %v1344_v24  ;;  %v1222_v51 = vsel %vm963_vm1, %v2697_v34, 0.0  ;;  %vm1367_vm3 = vcmp.eq.f32.partialorder %v1366_v0, 8.507059e+37 }
 0x2e2   : > { %2108 = vpow2.f32 %v1138_v47  ;;  %1223 = vadd.xlane.f32.xlu0 %v1222_v51 }
 0x2e3   : > { %v1346_v10 = vadd.f32 %v2103_v1, %v1345_v52 }
 0x2e4   : > { %v2107_v41 = vpop.eup %2106 }
 0x2e5   : > { %v1350_v42 = vsel %vm1349_vm13, %v2103_v1, %v1346_v10  ;;  %v1358_v53 = vmul.f32 %v2107_v41, %v1179_v26  ;;  %v1182_v54 = vpop.xlane.xlu1 %1181  ;;  %vm1363_vm15 = vweird.f32 %v2107_v41 }
 0x2e6   : > { %v1355_v59 = vsel %vm1352_vm14, %v1354_v56, %v1350_v42  ;;  %2110 = vrcp.f32 %v1182_v54  ;;  %vm1364_vm2 = vmor %vm1362_vm0, %vm1363_vm15  ;;  %v1383_v46 = vand.u32 2147483648, %v1182_v54  ;;  %v1381_v23 = vand.u32 2147483647, %v1182_v54 }
 0x2e7   : > { %v1356_v62 = vmul.f32 %v2548_v36, %v1355_v59  ;;  %v1359_v37 = vsub.f32 1.0, %v1358_v53  ;;  %v1369_v36 = vor.u32 1.1754944e-38, %v1368_v35  ;;  %vm1377_vm5 = vweird.f32 %v1182_v54 }
 0x2e8   : > { %v2704_v55 = vpop.eup %2108  ;;  %v1384_v28 = vor.u32 1.1754944e-38, %v1383_v46  ;;  %vm1382_vm7 = vcmp.eq.f32.partialorder %v1381_v23, 8.507059e+37 }
 0x2e9   : > { %1738 = vst.msk [vmem:[%s2645_s11 + $0x30] sm:$0xff] %vm963_vm1, %v1356_v62  ;;  %v1360_v15 = vmul.f32 %v2107_v41, %v1359_v37  ;;  %v1225_v3 = vsel %vm963_vm1, %v2704_v55, 0.0 }
 0x2ea   : > { %1226 = vadd.xlane.f32.xlu1 %v1225_v3 }
 0x2eb   : > { %v1361_v5 = vadd.f32 %v2107_v41, %v1360_v15  ;;  %v1038_v7 = vpop.xlane.xlu0 %1037 }
 0x2ec   : > { %v2111_v43 = vpop.eup %2110  ;;  %v1084_v12 = vsub.f32 %v2570_v39, %v1038_v7 }
 0x2ed   : > { %v1365_v33 = vsel %vm1364_vm2, %v2107_v41, %v1361_v5  ;;  %v1373_v17 = vmul.f32 %v2111_v43, %v1182_v54  ;;  %v1185_v18 = vpop.xlane.xlu2 %1184  ;;  %vm1378_vm4 = vweird.f32 %v2111_v43 }
 0x2ee   : > { %v1370_v25 = vsel %vm1367_vm3, %v1369_v36, %v1365_v33  ;;  %v1140_v19 = vmul.f32 1.442695, %v1084_v12  ;;  %2112 = vrcp.f32 %v1185_v18  ;;  %vm1379_vm6 = vmor %vm1377_vm5, %vm1378_vm4  ;;  %v1398_v10 = vand.u32 2147483648, %v1185_v18 }
 0x2ef   : > { %v1371_v21 = vmul.f32 %v2558_v11, %v1370_v25  ;;  %v1374_v1 = vsub.f32 1.0, %v1373_v17  ;;  %v1396_v56 = vand.u32 2147483647, %v1185_v18  ;;  %vm1392_vm9 = vweird.f32 %v1185_v18 }
 0x2f0   : > { %2114 = vpow2.f32 %v1140_v19  ;;  %v1399_v59 = vor.u32 1.1754944e-38, %v1398_v10 }
 0x2f1   : > { %1739 = vst.msk [vmem:[%s2645_s11 + $0x38] sm:$0xff] %vm963_vm1, %v1371_v21  ;;  %v1375_v2 = vmul.f32 %v2111_v43, %v1374_v1  ;;  %vm1397_vm11 = vcmp.eq.f32.partialorder %v1396_v56, 8.507059e+37 }
 0x2f3   : > { %v1376_v45 = vadd.f32 %v2111_v43, %v1375_v2  ;;  %v1041_v39 = vpop.xlane.xlu1 %1040 }
 0x2f4   : > { %v2113_v26 = vpop.eup %2112  ;;  %v1085_v30 = vsub.f32 %v2580_v38, %v1041_v39 }
 0x2f5   : > { %v1380_v9 = vsel %vm1379_vm6, %v2111_v43, %v1376_v45  ;;  %v1388_v11 = vmul.f32 %v2113_v26, %v1185_v18  ;;  %v1188_v24 = vpop.xlane.xlu0 %1187  ;;  %vm1393_vm8 = vweird.f32 %v2113_v26 }
 0x2f6   : > { %v2715_v16 = vpop.eup %2114  ;;  %v1385_v47 = vsel %vm1382_vm7, %v1384_v28, %v1380_v9  ;;  %v1142_v52 = vmul.f32 1.442695, %v1085_v30  ;;  %2116 = vrcp.f32 %v1188_v24  ;;  %vm1394_vm10 = vmor %vm1392_vm9, %vm1393_vm8  ;;  %v1413_v43 = vand.u32 2147483648, %v1188_v24 }
 0x2f7   : > { %v1386_v48 = vmul.f32 %v2565_v13, %v1385_v47  ;;  %v1389_v51 = vsub.f32 1.0, %v1388_v11  ;;  %v1228_v41 = vsel %vm963_vm1, %v2715_v16, 0.0  ;;  %vm1407_vm13 = vweird.f32 %v1188_v24 }
 0x2f8   : > { %2118 = vpow2.f32 %v1142_v52  ;;  %1229 = vadd.xlane.f32.xlu2 %v1228_v41  ;;  %v1414_v17 = vor.u32 1.1754944e-38, %v1413_v43 }
 0x2f9   : > { %1740 = vst.msk [vmem:[%s2645_s11 + $0x40] sm:$0xff] %vm963_vm1, %v1386_v48  ;;  %v1390_v38 = vmul.f32 %v2113_v26, %v1389_v51 }
 0x2fb   : > { %v1391_v42 = vadd.f32 %v2113_v26, %v1390_v38  ;;  %v1044_v53 = vpop.xlane.xlu2 %1043 }
 0x2fc   : > { %v2117_v54 = vpop.eup %2116  ;;  %v1086_v13 = vsub.f32 %v2589_v44, %v1044_v53  ;;  %v1411_v44 = vand.u32 2147483647, %v1188_v24 }
 0x2fd   : > { %v1395_v62 = vsel %vm1394_vm10, %v2113_v26, %v1391_v42  ;;  %v1403_v37 = vmul.f32 %v2117_v54, %v1188_v24  ;;  %vm1408_vm12 = vweird.f32 %v2117_v54 }
 0x2fe   : > { %v2723_v35 = vpop.eup %2118  ;;  %v1400_v15 = vsel %vm1397_vm11, %v1399_v59, %v1395_v62  ;;  %v1144_v0 = vmul.f32 1.442695, %v1086_v13  ;;  %vm1409_vm14 = vmor %vm1407_vm13, %vm1408_vm12  ;;  %vm1412_vm15 = vcmp.eq.f32.partialorder %v1411_v44, 8.507059e+37 }
 0x2ff   : > { %v1401_v3 = vmul.f32 %v2575_v31, %v1400_v15  ;;  %v1404_v5 = vsub.f32 1.0, %v1403_v37  ;;  %v1231_v7 = vsel %vm963_vm1, %v2723_v35, 0.0 }
 0x300   : > { %2120 = vpow2.f32 %v1144_v0  ;;  %1232 = vadd.xlane.f32.xlu0 %v1231_v7 }
 0x301   : > { %1741 = vst.msk [vmem:[%s2645_s11 + $0x48] sm:$0xff] %vm963_vm1, %v1401_v3  ;;  %v1405_v36 = vmul.f32 %v2117_v54, %v1404_v5 }
 0x303   : > { %v1406_v12 = vadd.f32 %v2117_v54, %v1405_v36  ;;  %v1047_v33 = vpop.xlane.xlu0 %1046 }
 0x304   : > { %v1087_v31 = vsub.f32 %v2594_v50, %v1047_v33 }
 0x305   : > { %v1410_v18 = vsel %vm1409_vm14, %v2117_v54, %v1406_v12 }
 0x306   : > { %v2731_v25 = vpop.eup %2120  ;;  %v1415_v19 = vsel %vm1412_vm15, %v1414_v17, %v1410_v18  ;;  %v1146_v21 = vmul.f32 1.442695, %v1087_v31 }
 0x307   : > { %v1416_v1 = vmul.f32 %v2584_v27, %v1415_v19  ;;  %v1234_v46 = vsel %vm963_vm1, %v2731_v25, 0.0 }
 0x308   : > { %2122 = vpow2.f32 %v1146_v21  ;;  %1235 = vadd.xlane.f32.xlu1 %v1234_v46 }
 0x309   : > { %1742 = vst.msk [vmem:[%s2645_s11 + $0x50] sm:$0xff] %vm963_vm1, %v1416_v1 }
 0x30b   : > { %v1050_v2 = vpop.xlane.xlu1 %1049 }
 0x30c   : > { %v1088_v23 = vsub.f32 %v2599_v57, %v1050_v2 }
 0x30e   : > { %v2739_v45 = vpop.eup %2122  ;;  %v1148_v50 = vmul.f32 1.442695, %v1088_v23 }
 0x30f   : > { %v1237_v39 = vsel %vm963_vm1, %v2739_v45, 0.0 }
 0x310   : > { %2124 = vpow2.f32 %v1148_v50  ;;  %1238 = vadd.xlane.f32.xlu2 %v1237_v39 }
 0x313   : > { %v1053_v26 = vpop.xlane.xlu2 %1052 }
 0x314   : > { %v1089_v27 = vsub.f32 %v2606_v6, %v1053_v26 }
 0x316   : > { %v2744_v28 = vpop.eup %2124  ;;  %v1150_v30 = vmul.f32 1.442695, %v1089_v27 }
 0x317   : > { %v1240_v9 = vsel %vm963_vm1, %v2744_v28, 0.0 }
 0x318   : > { %2126 = vpow2.f32 %v1150_v30  ;;  %1241 = vadd.xlane.f32.xlu0 %v1240_v9 }
 0x31b   : > { %v1194_v57 = vpop.xlane.xlu2 %1193  ;;  %v1056_v11 = vpop.xlane.xlu0 %1055 }
 0x31c   : > { %2128 = vrcp.f32 %v1194_v57  ;;  %v1090_v24 = vsub.f32 %v2615_v49, %v1056_v11  ;;  %v1443_v53 = vand.u32 2147483648, %v1194_v57  ;;  %v1441_v13 = vand.u32 2147483647, %v1194_v57 }
 0x31d   : > { %vm1437_vm2 = vweird.f32 %v1194_v57 }
 0x31e   : > { %v2749_v47 = vpop.eup %2126  ;;  %v1152_v52 = vmul.f32 1.442695, %v1090_v24  ;;  %vm1442_vm4 = vcmp.eq.f32.partialorder %v1441_v13, 8.507059e+37 }
 0x31f   : > { %v1243_v48 = vsel %vm963_vm1, %v2749_v47, 0.0 }
 0x320   : > { %1244 = vadd.xlane.f32.xlu1 %v1243_v48  ;;  %2130 = vpow2.f32 %v1152_v52 }
 0x322   : > { %v2129_v6 = vpop.eup %2128 }
 0x323   : > { %v1433_v51 = vmul.f32 %v2129_v6, %v1194_v57  ;;  %v1059_v10 = vpop.xlane.xlu1 %1058  ;;  %v1197_v41 = vpop.xlane.xlu0 %1196  ;;  %vm1438_vm0 = vweird.f32 %v2129_v6 }
 0x324   : > { %v1091_v38 = vsub.f32 %v2628_v40, %v1059_v10  ;;  %v1203_v56 = vpop.xlane.xlu2 %1202  ;;  %2132 = vrcp.f32 %v1197_v41  ;;  %vm1439_vm3 = vmor %vm1437_vm2, %vm1438_vm0  ;;  %v1444_v40 = vor.u32 1.1754944e-38, %v1443_v53  ;;  %v1458_v18 = vand.u32 2147483648, %v1197_v41 }
 0x325   : > { %v1434_v42 = vsub.f32 1.0, %v1433_v51  ;;  %2134 = vrcp.f32 %v1203_v56  ;;  %v1488_v19 = vand.u32 2147483648, %v1203_v56  ;;  %v1456_v1 = vand.u32 2147483647, %v1197_v41 }
 0x326   : > { %v1154_v49 = vmul.f32 1.442695, %v1091_v38  ;;  %v2754_v54 = vpop.eup %2130  ;;  %v1486_v2 = vand.u32 2147483647, %v1203_v56  ;;  %vm1452_vm7 = vweird.f32 %v1197_v41  ;;  %vm1482_vm8 = vweird.f32 %v1203_v56 }
 0x327   : > { %v1435_v59 = vmul.f32 %v2129_v6, %v1434_v42  ;;  %v1246_v62 = vsel %vm963_vm1, %v2754_v54, 0.0  ;;  %v1459_v26 = vor.u32 1.1754944e-38, %v1458_v18  ;;  %v1489_v27 = vor.u32 1.1754944e-38, %v1488_v19 }
 0x328   : > { %2136 = vpow2.f32 %v1154_v49  ;;  %1247 = vadd.xlane.f32.xlu2 %v1246_v62  ;;  %vm1457_vm11 = vcmp.eq.f32.partialorder %v1456_v1, 8.507059e+37  ;;  %vm1487_vm12 = vcmp.eq.f32.partialorder %v1486_v2, 8.507059e+37 }
 0x329   : > { %v1436_v37 = vadd.f32 %v2129_v6, %v1435_v59 }
 0x32a   : > { %v2133_v15 = vpop.eup %2132 }
 0x32b   : > { %v2135_v0 = vpop.eup %2134  ;;  %v1440_v3 = vsel %vm1439_vm3, %v2129_v6, %v1436_v37  ;;  %v1448_v5 = vmul.f32 %v2133_v15, %v1197_v41  ;;  %v2758_v7 = vpop.xlane.xlu1 %1190  ;;  %vm1453_vm5 = vweird.f32 %v2133_v15 }
 0x32c   : > { %v2760_v43 = vpop.xlane.xlu0 %1205  ;;  %v1445_v36 = vsel %vm1442_vm4, %v1444_v40, %v1440_v3  ;;  %v1478_v44 = vmul.f32 %v2135_v0, %v1203_v56  ;;  %2138 = vrcp.f32 %v2758_v7  ;;  %vm1483_vm6 = vweird.f32 %v2135_v0  ;;  %vm1454_vm9 = vmor %vm1452_vm7, %vm1453_vm5 }
 0x32d   : > { %v1446_v12 = vmul.f32 %v2611_v14, %v1445_v36  ;;  %v1449_v33 = vsub.f32 1.0, %v1448_v5  ;;  %2140 = vrcp.f32 %v2760_v43  ;;  %vm1484_vm10 = vmor %vm1482_vm8, %vm1483_vm6  ;;  %v1426_v38 = vand.u32 2147483647, %v2758_v7 }
 0x32e   : > { %v2764_v17 = vpop.eup %2136  ;;  %v1479_v31 = vsub.f32 1.0, %v1478_v44  ;;  %v1428_v56 = vand.u32 2147483648, %v2758_v7  ;;  %vm1422_vm14 = vweird.f32 %v2758_v7  ;;  %vm1497_vm2 = vweird.f32 %v2760_v43 }
 0x32f   : > { %1744 = vst.msk [vmem:[%s2645_s11 + $0x60] sm:$0xff] %vm963_vm1, %v1446_v12  ;;  %v1450_v21 = vmul.f32 %v2133_v15, %v1449_v33  ;;  %v1249_v23 = vsel %vm963_vm1, %v2764_v17, 0.0  ;;  %vm1427_vm3 = vcmp.eq.f32.partialorder %v1426_v38, 8.507059e+37 }
 0x330   : > { %v1480_v46 = vmul.f32 %v2135_v0, %v1479_v31  ;;  %1250 = vadd.xlane.f32.xlu0 %v1249_v23  ;;  %v1429_v37 = vor.u32 1.1754944e-38, %v1428_v56 }
 0x331   : > { %v1451_v14 = vadd.f32 %v2133_v15, %v1450_v21 }
 0x332   : > { %v2139_v50 = vpop.eup %2138  ;;  %v1481_v39 = vadd.f32 %v2135_v0, %v1480_v46 }
 0x333   : > { %v1455_v30 = vsel %vm1454_vm9, %v2133_v15, %v1451_v14  ;;  %v1418_v9 = vmul.f32 %v2139_v50, %v2758_v7  ;;  %v2772_v57 = vpop.xlane.xlu1 %1199  ;;  %v2141_v11 = vpop.eup %2140  ;;  %vm1423_vm13 = vweird.f32 %v2139_v50 }
 0x334   : > { %v1485_v24 = vsel %vm1484_vm10, %v2135_v0, %v1481_v39  ;;  %v1460_v52 = vsel %vm1457_vm11, %v1459_v26, %v1455_v30  ;;  %2142 = vrcp.f32 %v2772_v57  ;;  %v1493_v10 = vmul.f32 %v2141_v11, %v2760_v43  ;;  %vm1424_vm0 = vmor %vm1422_vm14, %vm1423_vm13 }
 0x335   : > { %v1490_v48 = vsel %vm1487_vm12, %v1489_v27, %v1485_v24  ;;  %v1461_v6 = vmul.f32 %v2622_v29, %v1460_v52  ;;  %v1419_v51 = vsub.f32 1.0, %v1418_v9  ;;  %v1212_v42 = vpop.xlane.xlu2 %1211  ;;  %v1503_v29 = vand.u32 2147483648, %v2760_v43 }
 0x336   : > { %v1491_v41 = vmul.f32 %v2625_v8, %v1490_v48  ;;  %v1494_v49 = vsub.f32 1.0, %v1493_v10  ;;  %2144 = vrcp.f32 %v1212_v42  ;;  %vm1498_vm15 = vweird.f32 %v2141_v11 }
 0x337   : > { %1745 = vst.msk [vmem:[%s2645_s11 + $0x68] sm:$0xff] %vm963_vm1, %v1461_v6  ;;  %v1420_v53 = vmul.f32 %v2139_v50, %v1419_v51  ;;  %v1501_v8 = vand.u32 2147483647, %v2760_v43  ;;  %vm1499_vm4 = vmor %vm1497_vm2, %vm1498_vm15  ;;  %v1504_v7 = vor.u32 1.1754944e-38, %v1503_v29  ;;  %v1471_v18 = vand.u32 2147483647, %v2772_v57 }
 0x338   : > { %1747 = vst.msk [vmem:[%s2645_s11 + $0x78] sm:$0xff] %vm963_vm1, %v1491_v41  ;;  %v1495_v13 = vmul.f32 %v2141_v11, %v1494_v49  ;;  %v1473_v19 = vand.u32 2147483648, %v2772_v57  ;;  %vm1467_vm7 = vweird.f32 %v2772_v57  ;;  %v1531_v23 = vand.u32 2147483647, %v1212_v42 }
 0x339   : > { %v1421_v59 = vadd.f32 %v2139_v50, %v1420_v53  ;;  %vm1502_vm5 = vcmp.eq.f32.partialorder %v1501_v8, 8.507059e+37  ;;  %v1533_v14 = vand.u32 2147483648, %v1212_v42  ;;  %vm1472_vm10 = vcmp.eq.f32.partialorder %v1471_v18, 8.507059e+37 }
 0x33a   : > { %v2143_v62 = vpop.eup %2142  ;;  %v1496_v40 = vadd.f32 %v2141_v11, %v1495_v13  ;;  %v1474_v39 = vor.u32 1.1754944e-38, %v1473_v19  ;;  %vm1527_vm11 = vweird.f32 %v1212_v42  ;;  %vm1532_vm13 = vcmp.eq.f32.partialorder %v1531_v23, 8.507059e+37 }
 0x33b   : > { %v1425_v15 = vsel %vm1424_vm0, %v2139_v50, %v1421_v59  ;;  %v1463_v0 = vmul.f32 %v2143_v62, %v2772_v57  ;;  %v2789_v3 = vpop.xlane.xlu1 %1208  ;;  %vm1468_vm6 = vweird.f32 %v2143_v62  ;;  %v1534_v57 = vor.u32 1.1754944e-38, %v1533_v14 }
 0x33c   : > { %v1430_v5 = vsel %vm1427_vm3, %v1429_v37, %v1425_v15  ;;  %2146 = vrcp.f32 %v2789_v3  ;;  %v2145_v36 = vpop.eup %2144  ;;  %v1500_v12 = vsel %vm1499_vm4, %v2141_v11, %v1496_v40  ;;  %vm1469_vm8 = vmor %vm1467_vm7, %vm1468_vm6  ;;  %v1518_v51 = vand.u32 2147483648, %v2789_v3 }
 0x33d   : > { %v1431_v44 = vmul.f32 %v2636_v60, %v1430_v5  ;;  %v1464_v43 = vsub.f32 1.0, %v1463_v0  ;;  %v2793_v33 = vpop.xlane.xlu0 %1214  ;;  %v1505_v31 = vsel %vm1502_vm5, %v1504_v7, %v1500_v12  ;;  %v1523_v21 = vmul.f32 %v2145_v36, %v1212_v42 }
 0x33e   : > { %v1506_v1 = vmul.f32 %v2638_v61, %v1505_v31  ;;  %2148 = vrcp.f32 %v2793_v33  ;;  %vm1528_vm9 = vweird.f32 %v2145_v36  ;;  %v1516_v56 = vand.u32 2147483647, %v2789_v3 }
 0x33f   : > { %1743 = vst.msk [vmem:[%s2645_s11 + $0x58] sm:$0xff] %vm963_vm1, %v1431_v44  ;;  %v1465_v46 = vmul.f32 %v2143_v62, %v1464_v43  ;;  %v1524_v60 = vsub.f32 1.0, %v1523_v21  ;;  %vm1529_vm12 = vmor %vm1527_vm11, %vm1528_vm9  ;;  %vm1512_vm15 = vweird.f32 %v2789_v3  ;;  %v1548_v49 = vand.u32 2147483648, %v2793_v33 }
 0x340   : > { %1748 = vst.msk [vmem:[%s2645_s11 + $0x80] sm:$0xff] %vm963_vm1, %v1506_v1  ;;  %v1519_v29 = vor.u32 1.1754944e-38, %v1518_v51  ;;  %v1546_v13 = vand.u32 2147483647, %v2793_v33  ;;  %vm1517_vm3 = vcmp.eq.f32.partialorder %v1516_v56, 8.507059e+37  ;;  %vm1542_vm4 = vweird.f32 %v2793_v33 }
 0x341   : > { %v1466_v2 = vadd.f32 %v2143_v62, %v1465_v46  ;;  %v1525_v26 = vmul.f32 %v2145_v36, %v1524_v60  ;;  %v1549_v40 = vor.u32 1.1754944e-38, %v1548_v49 }
 0x342   : > { %v2147_v50 = vpop.eup %2146  ;;  %vm1547_vm6 = vcmp.eq.f32.partialorder %v1546_v13, 8.507059e+37 }
 0x343   : > { %v1470_v27 = vsel %vm1469_vm8, %v2143_v62, %v1466_v2  ;;  %v1508_v61 = vmul.f32 %v2147_v50, %v2789_v3  ;;  %v1526_v9 = vadd.f32 %v2145_v36, %v1525_v26  ;;  %vm1513_vm14 = vweird.f32 %v2147_v50 }
 0x344   : > { %v1475_v30 = vsel %vm1472_vm10, %v1474_v39, %v1470_v27  ;;  %v2149_v11 = vpop.eup %2148  ;;  %vm1514_vm0 = vmor %vm1512_vm15, %vm1513_vm14 }
 0x345   : > { %v1476_v24 = vmul.f32 %v2655_v32, %v1475_v30  ;;  %v1509_v52 = vsub.f32 1.0, %v1508_v61  ;;  %v1218_v48 = vpop.xlane.xlu1 %1217  ;;  %v1530_v6 = vsel %vm1529_vm12, %v2145_v36, %v1526_v9  ;;  %v1538_v10 = vmul.f32 %v2149_v11, %v2793_v33 }
 0x346   : > { %2150 = vrcp.f32 %v1218_v48  ;;  %v1535_v41 = vsel %vm1532_vm13, %v1534_v57, %v1530_v6  ;;  %vm1543_vm2 = vweird.f32 %v2149_v11  ;;  %v1563_v12 = vand.u32 2147483648, %v1218_v48 }
 0x347   : > { %1746 = vst.msk [vmem:[%s2645_s11 + $0x70] sm:$0xff] %vm963_vm1, %v1476_v24  ;;  %v1510_v38 = vmul.f32 %v2147_v50, %v1509_v52  ;;  %v1536_v32 = vmul.f32 %v2661_v22, %v1535_v41  ;;  %v1539_v42 = vsub.f32 1.0, %v1538_v10  ;;  %vm1544_vm5 = vmor %vm1542_vm4, %vm1543_vm2  ;;  %v1561_v33 = vand.u32 2147483647, %v1218_v48 }
 0x348   : > { %vm1557_vm8 = vweird.f32 %v1218_v48  ;;  %v1564_v31 = vor.u32 1.1754944e-38, %v1563_v12 }
 0x349   : > { %v1511_v53 = vadd.f32 %v2147_v50, %v1510_v38  ;;  %1750 = vst.msk [vmem:[%s2645_s11 + $0x90] sm:$0xff] %vm963_vm1, %v1536_v32  ;;  %v1540_v59 = vmul.f32 %v2149_v11, %v1539_v42  ;;  %vm1562_vm10 = vcmp.eq.f32.partialorder %v1561_v33, 8.507059e+37 }
 0x34b   : > { %v1515_v8 = vsel %vm1514_vm0, %v2147_v50, %v1511_v53  ;;  %v1541_v22 = vadd.f32 %v2149_v11, %v1540_v59 }
 0x34c   : > { %v2151_v62 = vpop.eup %2150  ;;  %v1520_v37 = vsel %vm1517_vm3, %v1519_v29, %v1515_v8 }
 0x34d   : > { %v1521_v15 = vmul.f32 %v2667_v63, %v1520_v37  ;;  %v1553_v0 = vmul.f32 %v2151_v62, %v1218_v48  ;;  %v1545_v3 = vsel %vm1544_vm5, %v2149_v11, %v1541_v22  ;;  %v1221_v5 = vpop.xlane.xlu2 %1220  ;;  %vm1558_vm7 = vweird.f32 %v2151_v62 }
 0x34e   : > { %v1550_v7 = vsel %vm1547_vm6, %v1549_v40, %v1545_v3  ;;  %2152 = vrcp.f32 %v1221_v5  ;;  %vm1559_vm9 = vmor %vm1557_vm8, %vm1558_vm7  ;;  %v1578_v2 = vand.u32 2147483648, %v1221_v5  ;;  %v1576_v14 = vand.u32 2147483647, %v1221_v5 }
 0x34f   : > { %1749 = vst.msk [vmem:[%s2645_s11 + $0x88] sm:$0xff] %vm963_vm1, %v1521_v15  ;;  %v1554_v36 = vsub.f32 1.0, %v1553_v0  ;;  %v1551_v44 = vmul.f32 %v2673_v20, %v1550_v7  ;;  %vm1572_vm12 = vweird.f32 %v1221_v5 }
 0x350   : > { %v1579_v26 = vor.u32 1.1754944e-38, %v1578_v2  ;;  %vm1577_vm14 = vcmp.eq.f32.partialorder %v1576_v14, 8.507059e+37 }
 0x351   : > { %v1555_v43 = vmul.f32 %v2151_v62, %v1554_v36  ;;  %1751 = vst.msk [vmem:[%s2645_s11 + $0x98] sm:$0xff] %vm963_vm1, %v1551_v44 }
 0x353   : > { %v1556_v63 = vadd.f32 %v2151_v62, %v1555_v43 }
 0x354   : > { %v2153_v18 = vpop.eup %2152 }
 0x355   : > { %v1560_v19 = vsel %vm1559_vm9, %v2151_v62, %v1556_v63  ;;  %v1224_v21 = vpop.xlane.xlu0 %1223  ;;  %v1568_v46 = vmul.f32 %v2153_v18, %v1221_v5  ;;  %vm1573_vm11 = vweird.f32 %v2153_v18 }
 0x356   : > { %v1565_v1 = vsel %vm1562_vm10, %v1564_v31, %v1560_v19  ;;  %2154 = vrcp.f32 %v1224_v21  ;;  %vm1574_vm13 = vmor %vm1572_vm12, %vm1573_vm11  ;;  %v1593_v24 = vand.u32 2147483648, %v1224_v21  ;;  %v1591_v52 = vand.u32 2147483647, %v1224_v21 }
 0x357   : > { %v1566_v20 = vmul.f32 %v2681_v58, %v1565_v1  ;;  %v1569_v60 = vsub.f32 1.0, %v1568_v46  ;;  %vm1587_vm0 = vweird.f32 %v1224_v21 }
 0x358   : > { %v1594_v51 = vor.u32 1.1754944e-38, %v1593_v24  ;;  %vm1592_vm3 = vcmp.eq.f32.partialorder %v1591_v52, 8.507059e+37 }
 0x359   : > { %1752 = vst.msk [vmem:[%s2645_s11 + $0xa0] sm:$0xff] %vm963_vm1, %v1566_v20  ;;  %v1570_v23 = vmul.f32 %v2153_v18, %v1569_v60 }
 0x35b   : > { %v1571_v39 = vadd.f32 %v2153_v18, %v1570_v23 }
 0x35c   : > { %v2155_v50 = vpop.eup %2154 }
 0x35d   : > { %v1583_v27 = vmul.f32 %v2155_v50, %v1224_v21  ;;  %v1227_v61 = vpop.xlane.xlu1 %1226  ;;  %v1575_v30 = vsel %vm1574_vm13, %v2153_v18, %v1571_v39  ;;  %vm1588_vm15 = vweird.f32 %v2155_v50 }
 0x35e   : > { %2156 = vrcp.f32 %v1227_v61  ;;  %v1580_v9 = vsel %vm1577_vm14, %v1579_v26, %v1575_v30  ;;  %vm1589_vm2 = vmor %vm1587_vm0, %vm1588_vm15  ;;  %v1606_v53 = vand.u32 2147483647, %v1227_v61  ;;  %vm1602_vm5 = vweird.f32 %v1227_v61 }
 0x35f   : > { %v1584_v58 = vsub.f32 1.0, %v1583_v27  ;;  %v1581_v11 = vmul.f32 %v2689_v4, %v1580_v9  ;;  %v1608_v4 = vand.u32 2147483648, %v1227_v61 }
 0x360   : > { %vm1607_vm7 = vcmp.eq.f32.partialorder %v1606_v53, 8.507059e+37 }
 0x361   : > { %v1585_v57 = vmul.f32 %v2155_v50, %v1584_v58  ;;  %1753 = vst.msk [vmem:[%s2645_s11 + $0xa8] sm:$0xff] %vm963_vm1, %v1581_v11  ;;  %v1609_v29 = vor.u32 1.1754944e-38, %v1608_v4 }
 0x363   : > { %v1586_v48 = vadd.f32 %v2155_v50, %v1585_v57 }
 0x364   : > { %v2157_v6 = vpop.eup %2156 }
 0x365   : > { %v1590_v10 = vsel %vm1589_vm2, %v2155_v50, %v1586_v48  ;;  %v1598_v41 = vmul.f32 %v2157_v6, %v1227_v61  ;;  %vm1603_vm4 = vweird.f32 %v2157_v6 }
 0x366   : > { %v1595_v38 = vsel %vm1592_vm3, %v1594_v51, %v1590_v10  ;;  %vm1604_vm6 = vmor %vm1602_vm5, %vm1603_vm4 }
 0x367   : > { %v1596_v56 = vmul.f32 %v2697_v34, %v1595_v38  ;;  %v1599_v32 = vsub.f32 1.0, %v1598_v41 }
 0x369   : > { %1754 = vst.msk [vmem:[%s2645_s11 + $0xb0] sm:$0xff] %vm963_vm1, %v1596_v56  ;;  %v1600_v42 = vmul.f32 %v2157_v6, %v1599_v32 }
 0x36b   : > { %v1601_v49 = vadd.f32 %v2157_v6, %v1600_v42  ;;  %v1230_v59 = vpop.xlane.xlu2 %1229 }
 0x36c   : > { %2158 = vrcp.f32 %v1230_v59  ;;  %v1623_v40 = vand.u32 2147483648, %v1230_v59  ;;  %v1621_v3 = vand.u32 2147483647, %v1230_v59  ;;  %vm1617_vm9 = vweird.f32 %v1230_v59 }
 0x36d   : > { %v1605_v13 = vsel %vm1604_vm6, %v2157_v6, %v1601_v49 }
 0x36e   : > { %v1610_v8 = vsel %vm1607_vm7, %v1609_v29, %v1605_v13  ;;  %v1624_v36 = vor.u32 1.1754944e-38, %v1623_v40  ;;  %vm1622_vm11 = vcmp.eq.f32.partialorder %v1621_v3, 8.507059e+37 }
 0x36f   : > { %v1611_v62 = vmul.f32 %v2704_v55, %v1610_v8 }
 0x371   : > { %1755 = vst.msk [vmem:[%s2645_s11 + $0xb8] sm:$0xff] %vm963_vm1, %v1611_v62 }
 0x372   : > { %v2159_v34 = vpop.eup %2158 }
 0x373   : > { %v1233_v37 = vpop.xlane.xlu0 %1232  ;;  %v1613_v22 = vmul.f32 %v2159_v34, %v1230_v59  ;;  %vm1618_vm8 = vweird.f32 %v2159_v34 }
 0x374   : > { %2160 = vrcp.f32 %v1233_v37  ;;  %vm1619_vm10 = vmor %vm1617_vm9, %vm1618_vm8  ;;  %v1638_v31 = vand.u32 2147483648, %v1233_v37  ;;  %v1636_v19 = vand.u32 2147483647, %v1233_v37  ;;  %vm1632_vm13 = vweird.f32 %v1233_v37 }
 0x375   : > { %v1614_v15 = vsub.f32 1.0, %v1613_v22 }
 0x376   : > { %v1639_v46 = vor.u32 1.1754944e-38, %v1638_v31  ;;  %vm1637_vm15 = vcmp.eq.f32.partialorder %v1636_v19, 8.507059e+37 }
 0x377   : > { %v1615_v0 = vmul.f32 %v2159_v34, %v1614_v15 }
 0x379   : > { %v1616_v7 = vadd.f32 %v2159_v34, %v1615_v0 }
 0x37a   : > { %v2161_v5 = vpop.eup %2160 }
 0x37b   : > { %v1628_v44 = vmul.f32 %v2161_v5, %v1233_v37  ;;  %v1236_v12 = vpop.xlane.xlu1 %1235  ;;  %v1620_v55 = vsel %vm1619_vm10, %v2159_v34, %v1616_v7  ;;  %vm1633_vm12 = vweird.f32 %v2161_v5 }
 0x37c   : > { %2162 = vrcp.f32 %v1236_v12  ;;  %v1625_v43 = vsel %vm1622_vm11, %v1624_v36, %v1620_v55  ;;  %vm1634_vm14 = vmor %vm1632_vm13, %vm1633_vm12  ;;  %v1653_v50 = vand.u32 2147483648, %v1236_v12  ;;  %v1651_v26 = vand.u32 2147483647, %v1236_v12 }
 0x37d   : > { %v1629_v33 = vsub.f32 1.0, %v1628_v44  ;;  %v1626_v63 = vmul.f32 %v2715_v16, %v1625_v43  ;;  %vm1647_vm2 = vweird.f32 %v1236_v12 }
 0x37e   : > { %v1654_v30 = vor.u32 1.1754944e-38, %v1653_v50  ;;  %vm1652_vm4 = vcmp.eq.f32.partialorder %v1651_v26, 8.507059e+37 }
 0x37f   : > { %v1630_v18 = vmul.f32 %v2161_v5, %v1629_v33  ;;  %1756 = vst.msk [vmem:[%s2645_s11 + $0xc0] sm:$0xff] %vm963_vm1, %v1626_v63 }
 0x381   : > { %v1631_v21 = vadd.f32 %v2161_v5, %v1630_v18 }
 0x382   : > { %v2163_v1 = vpop.eup %2162 }
 0x383   : > { %v1635_v20 = vsel %vm1634_vm14, %v2161_v5, %v1631_v21  ;;  %v1643_v60 = vmul.f32 %v2163_v1, %v1236_v12  ;;  %v1239_v2 = vpop.xlane.xlu2 %1238  ;;  %vm1648_vm0 = vweird.f32 %v2163_v1 }
 0x384   : > { %v1640_v23 = vsel %vm1637_vm15, %v1639_v46, %v1635_v20  ;;  %2164 = vrcp.f32 %v1239_v2  ;;  %vm1649_vm3 = vmor %vm1647_vm2, %vm1648_vm0  ;;  %v1668_v52 = vand.u32 2147483648, %v1239_v2  ;;  %v1666_v6 = vand.u32 2147483647, %v1239_v2 }
 0x385   : > { %v1641_v16 = vmul.f32 %v2723_v35, %v1640_v23  ;;  %v1644_v14 = vsub.f32 1.0, %v1643_v60  ;;  %vm1662_vm6 = vweird.f32 %v1239_v2 }
 0x386   : > { %v1669_v41 = vor.u32 1.1754944e-38, %v1668_v52  ;;  %vm1667_vm8 = vcmp.eq.f32.partialorder %v1666_v6, 8.507059e+37 }
 0x387   : > { %1757 = vst.msk [vmem:[%s2645_s11 + $0xc8] sm:$0xff] %vm963_vm1, %v1641_v16  ;;  %v1645_v39 = vmul.f32 %v2163_v1, %v1644_v14 }
 0x389   : > { %v1646_v27 = vadd.f32 %v2163_v1, %v1645_v39 }
 0x38a   : > { %v2165_v61 = vpop.eup %2164 }
 0x38b   : > { %v1650_v9 = vsel %vm1649_vm3, %v2163_v1, %v1646_v27  ;;  %v1658_v58 = vmul.f32 %v2165_v61, %v1239_v2  ;;  %v1242_v11 = vpop.xlane.xlu0 %1241  ;;  %vm1663_vm5 = vweird.f32 %v2165_v61 }
 0x38c   : > { %v1655_v24 = vsel %vm1652_vm4, %v1654_v30, %v1650_v9  ;;  %2166 = vrcp.f32 %v1242_v11  ;;  %vm1664_vm7 = vmor %vm1662_vm6, %vm1663_vm5  ;;  %v1683_v53 = vand.u32 2147483648, %v1242_v11  ;;  %v1681_v29 = vand.u32 2147483647, %v1242_v11 }
 0x38d   : > { %v1656_v35 = vmul.f32 %v2731_v25, %v1655_v24  ;;  %v1659_v57 = vsub.f32 1.0, %v1658_v58  ;;  %vm1677_vm10 = vweird.f32 %v1242_v11 }
 0x38e   : > { %v1684_v8 = vor.u32 1.1754944e-38, %v1683_v53  ;;  %vm1682_vm12 = vcmp.eq.f32.partialorder %v1681_v29, 8.507059e+37 }
 0x38f   : > { %1758 = vst.msk [vmem:[%s2645_s11 + $0xd0] sm:$0xff] %vm963_vm1, %v1656_v35  ;;  %v1660_v48 = vmul.f32 %v2165_v61, %v1659_v57 }
 0x391   : > { %v1661_v51 = vadd.f32 %v2165_v61, %v1660_v48 }
 0x392   : > { %v2167_v10 = vpop.eup %2166 }
 0x393   : > { %v1665_v38 = vsel %vm1664_vm7, %v2165_v61, %v1661_v51  ;;  %v1673_v56 = vmul.f32 %v2167_v10, %v1242_v11  ;;  %v1245_v32 = vpop.xlane.xlu1 %1244  ;;  %vm1678_vm9 = vweird.f32 %v2167_v10 }
 0x394   : > { %v1670_v4 = vsel %vm1667_vm8, %v1669_v41, %v1665_v38  ;;  %2168 = vrcp.f32 %v1245_v32  ;;  %vm1679_vm11 = vmor %vm1677_vm10, %vm1678_vm9  ;;  %v1698_v40 = vand.u32 2147483648, %v1245_v32  ;;  %v1696_v3 = vand.u32 2147483647, %v1245_v32 }
 0x395   : > { %v1671_v25 = vmul.f32 %v2739_v45, %v1670_v4  ;;  %v1674_v42 = vsub.f32 1.0, %v1673_v56  ;;  %vm1692_vm14 = vweird.f32 %v1245_v32 }
 0x396   : > { %v1699_v7 = vor.u32 1.1754944e-38, %v1698_v40  ;;  %vm1697_vm0 = vcmp.eq.f32.partialorder %v1696_v3, 8.507059e+37 }
 0x397   : > { %1759 = vst.msk [vmem:[%s2645_s11 + $0xd8] sm:$0xff] %vm963_vm1, %v1671_v25  ;;  %v1675_v49 = vmul.f32 %v2167_v10, %v1674_v42 }
 0x399   : > { %v1676_v59 = vadd.f32 %v2167_v10, %v1675_v49 }
 0x39a   : > { %v2169_v13 = vpop.eup %2168 }
 0x39b   : > { %v1680_v62 = vsel %vm1679_vm11, %v2167_v10, %v1676_v59  ;;  %v1688_v34 = vmul.f32 %v2169_v13, %v1245_v32  ;;  %v1248_v22 = vpop.xlane.xlu2 %1247  ;;  %vm1693_vm13 = vweird.f32 %v2169_v13 }
 0x39c   : > { %v1685_v37 = vsel %vm1682_vm12, %v1684_v8, %v1680_v62  ;;  %2170 = vrcp.f32 %v1248_v22  ;;  %vm1694_vm15 = vmor %vm1692_vm14, %vm1693_vm13  ;;  %v1713_v63 = vand.u32 2147483648, %v1248_v22  ;;  %v1711_v18 = vand.u32 2147483647, %v1248_v22 }
 0x39d   : > { %v1686_v45 = vmul.f32 %v2744_v28, %v1685_v37  ;;  %v1689_v15 = vsub.f32 1.0, %v1688_v34  ;;  %vm1707_vm3 = vweird.f32 %v1248_v22 }
 0x39e   : > { %v1714_v1 = vor.u32 1.1754944e-38, %v1713_v63  ;;  %vm1712_vm5 = vcmp.eq.f32.partialorder %v1711_v18, 8.507059e+37 }
 0x39f   : > { %1760 = vst.msk [vmem:[%s2645_s11 + $0xe0] sm:$0xff] %vm963_vm1, %v1686_v45  ;;  %v1690_v0 = vmul.f32 %v2169_v13, %v1689_v15 }
 0x3a1   : > { %v1691_v5 = vadd.f32 %v2169_v13, %v1690_v0 }
 0x3a2   : > { %v2171_v36 = vpop.eup %2170 }
 0x3a3   : > { %v1695_v44 = vsel %vm1694_vm15, %v2169_v13, %v1691_v5  ;;  %v1703_v55 = vmul.f32 %v2171_v36, %v1248_v22  ;;  %v1251_v43 = vpop.xlane.xlu0 %1250  ;;  %vm1708_vm2 = vweird.f32 %v2171_v36 }
 0x3a4   : > { %v1700_v12 = vsel %vm1697_vm0, %v1699_v7, %v1695_v44  ;;  %2172 = vrcp.f32 %v1251_v43  ;;  %vm1709_vm4 = vmor %vm1707_vm3, %vm1708_vm2  ;;  %v1728_v23 = vand.u32 2147483648, %v1251_v43  ;;  %v1726_v14 = vand.u32 2147483647, %v1251_v43 }
 0x3a5   : > { %v1701_v28 = vmul.f32 %v2749_v47, %v1700_v12  ;;  %v1704_v33 = vsub.f32 1.0, %v1703_v55  ;;  %vm1722_vm7 = vweird.f32 %v1251_v43 }
 0x3a6   : > { %v1729_v39 = vor.u32 1.1754944e-38, %v1728_v23  ;;  %vm1727_vm9 = vcmp.eq.f32.partialorder %v1726_v14, 8.507059e+37 }
 0x3a7   : > { %1761 = vst.msk [vmem:[%s2645_s11 + $0xe8] sm:$0xff] %vm963_vm1, %v1701_v28  ;;  %v1705_v31 = vmul.f32 %v2171_v36, %v1704_v33 }
 0x3a9   : > { %v1706_v19 = vadd.f32 %v2171_v36, %v1705_v31 }
 0x3aa   : > { %v2173_v21 = vpop.eup %2172 }
 0x3ab   : > { %v1710_v46 = vsel %vm1709_vm4, %v2171_v36, %v1706_v19  ;;  %v1718_v20 = vmul.f32 %v2173_v21, %v1251_v43  ;;  %vm1723_vm6 = vweird.f32 %v2173_v21 }
 0x3ac   : > { %v1715_v60 = vsel %vm1712_vm5, %v1714_v1, %v1710_v46  ;;  %vm1724_vm8 = vmor %vm1722_vm7, %vm1723_vm6 }
 0x3ad   : > { %v1716_v47 = vmul.f32 %v2754_v54, %v1715_v60  ;;  %v1719_v2 = vsub.f32 1.0, %v1718_v20 }
 0x3af   : > { %1762 = vst.msk [vmem:[%s2645_s11 + $0xf0] sm:$0xff] %vm963_vm1, %v1716_v47  ;;  %v1720_v16 = vmul.f32 %v2173_v21, %v1719_v2 }
 0x3b1   : > { %v1721_v50 = vadd.f32 %v2173_v21, %v1720_v16 }
 0x3b3   : > { %v1725_v26 = vsel %vm1724_vm8, %v2173_v21, %v1721_v50 }
 0x3b4   : > { %v1730_v27 = vsel %vm1727_vm9, %v1729_v39, %v1725_v26 }
 0x3b5   : > { %v1731_v61 = vmul.f32 %v2764_v17, %v1730_v27 }
 0x3b7   : > { %1763 = vst.msk [vmem:[%s2645_s11 + $0xf8] sm:$0xff] %vm963_vm1, %v1731_v61 }
 0x3b8 PF: > { %s17_s24 = sadd.s32 1, %s2180_s24  }
 0x3b9   : > { %p14_p4 = scmp.ge.s32.totalorder %s17_s24, 4  }
 0x3bb   :  { %16 = sbr.rel (!%p14_p4) target bundleno = 1 (0x1), region = 78 }

</bundles_post_ra>
